<compile_context>
chip_gen: v5e
topology: v5e:2x2
jax: 0.10.0
libtpu: 0.0.40
codegen_flags: <defaults>
</compile_context>

<pallas_src>
import functools

import jax
import jax.numpy as jnp
from jax.experimental import pallas as pl
from jax.experimental.pallas import tpu as pltpu

LAYER_DIMS = [28 * 28, 300, 300, 300, 300, 100, 10]
_LANE = 128


def _round_up(n, m):
    return (n + m - 1) // m * m


# ----------------------------- Pallas kernel --------------------------------


def fcdeep_kernel(x_ref, *rest):
    # x_ref: (TB, 784) bf16; w_refs: padded (Kp, Np) bf16; o_ref: (TB, 128) f32
    *w_refs, o_ref = rest
    h = x_ref[...]
    for w_ref in w_refs[:-1]:
        y = jnp.dot(h, w_ref[...], preferred_element_type=jnp.float32)
        h = jnp.maximum(y, 0.0).astype(jnp.bfloat16)   # ReLU in f32, bf16 MXU operand
    y = jnp.dot(h, w_refs[-1][...], preferred_element_type=jnp.float32)
    o_ref[...] = y.astype(o_ref.dtype)                 # lane-dense (TB, 128) store


# --------------------------- Parameter preparation ---------------------------


def prepare_fcdeep_params(weights):
    """Zero-pad feature dims to 128 multiples + cast to bf16.

    Call ONCE at init / parameter-update time; the forward takes the result.
    Layer-1 K stays 784 (unpadded) — the input block covers the full 784 dim.
    """
    assert len(weights) == len(LAYER_DIMS) - 1
    wps = []
    for li, w in enumerate(weights):
        fin, fout = w.shape
        assert (fin, fout) == (LAYER_DIMS[li], LAYER_DIMS[li + 1]), w.shape
        kin = fin if li == 0 else _round_up(fin, _LANE)
        kout = _round_up(fout, _LANE)
        wp = jnp.zeros((kin, kout), jnp.bfloat16)
        wps.append(wp.at[:fin, :fout].set(w.astype(jnp.bfloat16)))
    return tuple(wps)


# ------------------------------ Wrapper --------------------------------------


def _pick_batch_tiling(batch):
    """Returns (padded_batch, batch_tile_rows)."""
    bp16 = _round_up(batch, 16)       # bf16 packs 16 rows per sublane tile
    if bp16 <= 256:
        return bp16, bp16             # single full-batch block: no grid overhead
    # Large batch: 256-row tiles fill the MXU (v6e/v7x: 256 rows, v5e: 128);
    # >= 2 "parallel" blocks lets v7x shard across both TensorCores.
    bp = _round_up(batch, 256)
    return bp, 256


@jax.jit
def fcdeep_forward(x, padded_weights):
    """x: (B, 1, 28, 28) or (B, 784); padded_weights: prepare_fcdeep_params(...)."""
    B = x.shape[0]
    h = x.reshape(B, -1)
    assert h.shape[1] == LAYER_DIMS[0], h.shape

    Bp, block_b = _pick_batch_tiling(B)
    out_p = _round_up(LAYER_DIMS[-1], _LANE)   # 10 -> 128

    xb = h.astype(jnp.bfloat16)
    if Bp != B:
        xb = jnp.pad(xb, ((0, Bp - B), (0, 0)))

    flops = 2 * Bp * sum(int(w.shape[0]) * int(w.shape[1]) for w in padded_weights)
    bytes_accessed = (
        xb.size * 2
        + sum(int(w.size) * 2 for w in padded_weights)
        + Bp * out_p * 4
    )

    out = pl.pallas_call(
        fcdeep_kernel,
        out_shape=jax.ShapeDtypeStruct((Bp, out_p), jnp.float32),
        grid=(Bp // block_b,),
        in_specs=[pl.BlockSpec((block_b, LAYER_DIMS[0]), lambda i: (i, 0))]
        + [pl.BlockSpec(w.shape, lambda i: (0, 0)) for w in padded_weights],
        out_specs=pl.BlockSpec((block_b, out_p), lambda i: (i, 0)),
        compiler_params=pltpu.CompilerParams(
            dimension_semantics=("parallel",)),
        cost_estimate=pl.CostEstimate(
            flops=flops, transcendentals=0, bytes_accessed=bytes_accessed),
    )(xb, *padded_weights)

    # PyTorch: out.squeeze() on (B, 10, 1, 1)
    return jnp.squeeze(out[:B, :LAYER_DIMS[-1]])


# ------------------------------ References -----------------------------------


def ref_forward(x, weights, *, bf16):
    h = x.reshape(x.shape[0], -1).astype(jnp.float32)
    for i, w in enumerate(weights):
        if bf16:
            y = jnp.dot(h.astype(jnp.bfloat16), w.astype(jnp.bfloat16),
                        preferred_element_type=jnp.float32)
        else:
            y = h @ w
        h = jax.nn.relu(y) if i < len(weights) - 1 else y
    return jnp.squeeze(h)


# ------------------------------- Params / main --------------------------------


def init_params(key):
    ks = jax.random.split(key, len(LAYER_DIMS) - 1)
    ws = []
    for k, fin, fout in zip(ks, LAYER_DIMS[:-1], LAYER_DIMS[1:]):
        ws.append(jax.random.normal(k, (fin, fout), jnp.float32) / jnp.sqrt(fin))
    return ws


def _check(out, x, weights):
    # Tight check vs. a matched bf16-operand / f32-accumulate reference.
    ref_bf16 = jax.block_until_ready(ref_forward(x, weights, bf16=True))
    assert jnp.allclose(out, ref_bf16, rtol=1e-2, atol=1e-2), (
        float(jnp.max(jnp.abs(out - ref_bf16))))
    # Loose sanity check vs. the full-f32 reference (bf16 operands drift
    # ~0.5% per layer; accumulation is f32).
    ref_f32 = jax.block_until_ready(ref_forward(x, weights, bf16=False))
    assert jnp.allclose(out, ref_f32, rtol=0.25, atol=0.25), (
        float(jnp.max(jnp.abs(out - ref_f32))))


if __name__ == "__main__":
    key = jax.random.PRNGKey(0)
    kx, kx2, kp = jax.random.split(key, 3)
    weights = init_params(kp)
    padded_weights = prepare_fcdeep_params(weights)   # once, at init time

    # Small batch: single full-batch block (grid of 1).
    B = 16
    x = jax.random.normal(kx, (B, 1, 28, 28), jnp.float32)
    out = jax.block_until_ready(fcdeep_forward(x, padded_weights))
    assert out.shape == (B, 10), out.shape
    _check(out, x, weights)

    # Larger batch: 256-row tiles, 2 "parallel" blocks (spans both v7x cores).
    B2 = 512
    x2 = jax.random.normal(kx2, (B2, 1, 28, 28), jnp.float32)
    out2 = jax.block_until_ready(fcdeep_forward(x2, padded_weights))
    assert out2.shape == (B2, 10), out2.shape
    _check(out2, x2, weights)

    print("KERNEL_OK")
</pallas_src>

<mosaic_0001>
module attributes {stable_mosaic.version = 11 : i64} {
  func.func @fcdeep_kernel(%arg0: i32, %arg1: memref<16x784xbf16, #tpu.memory_space<vmem>>, %arg2: memref<784x384xbf16, #tpu.memory_space<vmem>>, %arg3: memref<384x384xbf16, #tpu.memory_space<vmem>>, %arg4: memref<384x384xbf16, #tpu.memory_space<vmem>>, %arg5: memref<384x384xbf16, #tpu.memory_space<vmem>>, %arg6: memref<384x128xbf16, #tpu.memory_space<vmem>>, %arg7: memref<128x128xbf16, #tpu.memory_space<vmem>>, %arg8: memref<16x128xf32, #tpu.memory_space<vmem>>) attributes {dimension_semantics = [#tpu.dimension_semantics<parallel>], iteration_bounds = array<i64: 1>, scalar_prefetch = 0 : i64, scratch_operands = 0 : i64, tpu.core_type = #tpu.core_type<tc>, window_params = [{transform_indices = @transform_0, window_bounds = array<i64: 16, 784>}, {pipeline_mode = #tpu.pipeline_mode<synchronous>, transform_indices = @transform_1, window_bounds = array<i64: 784, 384>}, {pipeline_mode = #tpu.pipeline_mode<synchronous>, transform_indices = @transform_2, window_bounds = array<i64: 384, 384>}, {pipeline_mode = #tpu.pipeline_mode<synchronous>, transform_indices = @transform_3, window_bounds = array<i64: 384, 384>}, {pipeline_mode = #tpu.pipeline_mode<synchronous>, transform_indices = @transform_4, window_bounds = array<i64: 384, 384>}, {pipeline_mode = #tpu.pipeline_mode<synchronous>, transform_indices = @transform_5, window_bounds = array<i64: 384, 128>}, {pipeline_mode = #tpu.pipeline_mode<synchronous>, transform_indices = @transform_6, window_bounds = array<i64: 128, 128>}, {transform_indices = @transform_7, window_bounds = array<i64: 16, 128>}]} {
    %c0 = arith.constant 0 : index
    %c0_0 = arith.constant 0 : index
    %0 = vector.load %arg1[%c0, %c0_0] : memref<16x784xbf16, #tpu.memory_space<vmem>>, vector<16x784xbf16>
    %c0_1 = arith.constant 0 : index
    %c0_2 = arith.constant 0 : index
    %1 = vector.load %arg2[%c0_1, %c0_2] : memref<784x384xbf16, #tpu.memory_space<vmem>>, vector<784x384xbf16>
    %cst = arith.constant dense<0.000000e+00> : vector<16x384xf32>
    %2 = tpu.matmul %0, %1, %cst {dimension_numbers = #tpu.dot_dimension_numbers<[1], [0], [0], [1], [0, 0, 1, 1], [], []>} : vector<16x784xbf16>, vector<784x384xbf16>, vector<16x384xf32> -> vector<16x384xf32>
    %cst_3 = arith.constant 0.000000e+00 : f32
    %3 = vector.broadcast %cst_3 : f32 to vector<16x384xf32>
    %4 = arith.maximumf %2, %3 : vector<16x384xf32>
    %5 = arith.truncf %4 : vector<16x384xf32> to vector<16x384xbf16>
    %c0_4 = arith.constant 0 : index
    %c0_5 = arith.constant 0 : index
    %6 = vector.load %arg3[%c0_4, %c0_5] : memref<384x384xbf16, #tpu.memory_space<vmem>>, vector<384x384xbf16>
    %cst_6 = arith.constant dense<0.000000e+00> : vector<16x384xf32>
    %7 = tpu.matmul %5, %6, %cst_6 {dimension_numbers = #tpu.dot_dimension_numbers<[1], [0], [0], [1], [0, 0, 1, 1], [], []>} : vector<16x384xbf16>, vector<384x384xbf16>, vector<16x384xf32> -> vector<16x384xf32>
    %cst_7 = arith.constant 0.000000e+00 : f32
    %8 = vector.broadcast %cst_7 : f32 to vector<16x384xf32>
    %9 = arith.maximumf %7, %8 : vector<16x384xf32>
    %10 = arith.truncf %9 : vector<16x384xf32> to vector<16x384xbf16>
    %c0_8 = arith.constant 0 : index
    %c0_9 = arith.constant 0 : index
    %11 = vector.load %arg4[%c0_8, %c0_9] : memref<384x384xbf16, #tpu.memory_space<vmem>>, vector<384x384xbf16>
    %cst_10 = arith.constant dense<0.000000e+00> : vector<16x384xf32>
    %12 = tpu.matmul %10, %11, %cst_10 {dimension_numbers = #tpu.dot_dimension_numbers<[1], [0], [0], [1], [0, 0, 1, 1], [], []>} : vector<16x384xbf16>, vector<384x384xbf16>, vector<16x384xf32> -> vector<16x384xf32>
    %cst_11 = arith.constant 0.000000e+00 : f32
    %13 = vector.broadcast %cst_11 : f32 to vector<16x384xf32>
    %14 = arith.maximumf %12, %13 : vector<16x384xf32>
    %15 = arith.truncf %14 : vector<16x384xf32> to vector<16x384xbf16>
    %c0_12 = arith.constant 0 : index
    %c0_13 = arith.constant 0 : index
    %16 = vector.load %arg5[%c0_12, %c0_13] : memref<384x384xbf16, #tpu.memory_space<vmem>>, vector<384x384xbf16>
    %cst_14 = arith.constant dense<0.000000e+00> : vector<16x384xf32>
    %17 = tpu.matmul %15, %16, %cst_14 {dimension_numbers = #tpu.dot_dimension_numbers<[1], [0], [0], [1], [0, 0, 1, 1], [], []>} : vector<16x384xbf16>, vector<384x384xbf16>, vector<16x384xf32> -> vector<16x384xf32>
    %cst_15 = arith.constant 0.000000e+00 : f32
    %18 = vector.broadcast %cst_15 : f32 to vector<16x384xf32>
    %19 = arith.maximumf %17, %18 : vector<16x384xf32>
    %20 = arith.truncf %19 : vector<16x384xf32> to vector<16x384xbf16>
    %c0_16 = arith.constant 0 : index
    %c0_17 = arith.constant 0 : index
    %21 = vector.load %arg6[%c0_16, %c0_17] : memref<384x128xbf16, #tpu.memory_space<vmem>>, vector<384x128xbf16>
    %cst_18 = arith.constant dense<0.000000e+00> : vector<16x128xf32>
    %22 = tpu.matmul %20, %21, %cst_18 {dimension_numbers = #tpu.dot_dimension_numbers<[1], [0], [0], [1], [0, 0, 1, 1], [], []>} : vector<16x384xbf16>, vector<384x128xbf16>, vector<16x128xf32> -> vector<16x128xf32>
    %cst_19 = arith.constant 0.000000e+00 : f32
    %23 = vector.broadcast %cst_19 : f32 to vector<16x128xf32>
    %24 = arith.maximumf %22, %23 : vector<16x128xf32>
    %25 = arith.truncf %24 : vector<16x128xf32> to vector<16x128xbf16>
    %c0_20 = arith.constant 0 : index
    %c0_21 = arith.constant 0 : index
    %26 = vector.load %arg7[%c0_20, %c0_21] : memref<128x128xbf16, #tpu.memory_space<vmem>>, vector<128x128xbf16>
    %cst_22 = arith.constant dense<0.000000e+00> : vector<16x128xf32>
    %27 = tpu.matmul %25, %26, %cst_22 {dimension_numbers = #tpu.dot_dimension_numbers<[1], [0], [0], [1], [0, 0, 1, 1], [], []>} : vector<16x128xbf16>, vector<128x128xbf16>, vector<16x128xf32> -> vector<16x128xf32>
    %c0_23 = arith.constant 0 : index
    %c0_24 = arith.constant 0 : index
    %28 = vector.load %arg8[%c0_23, %c0_24] : memref<16x128xf32, #tpu.memory_space<vmem>>, vector<16x128xf32>
    tpu.vector_store %arg8[%c0_23, %c0_24], %27 {strides = array<i32>} : memref<16x128xf32, #tpu.memory_space<vmem>>, vector<16x128xf32>,
    return
  }
  func.func @transform_0(%arg0: i32) -> (i32, i32) {
    %c0_i32 = arith.constant 0 : i32
    %c0_i32_0 = arith.constant 0 : i32
    return %arg0, %c0_i32 : i32, i32
  }
  func.func @transform_1(%arg0: i32) -> (i32, i32) {
    %c0_i32 = arith.constant 0 : i32
    %c0_i32_0 = arith.constant 0 : i32
    %c0_i32_1 = arith.constant 0 : i32
    return %c0_i32, %c0_i32_0 : i32, i32
  }
  func.func @transform_2(%arg0: i32) -> (i32, i32) {
    %c0_i32 = arith.constant 0 : i32
    %c0_i32_0 = arith.constant 0 : i32
    %c0_i32_1 = arith.constant 0 : i32
    return %c0_i32, %c0_i32_0 : i32, i32
  }
  func.func @transform_3(%arg0: i32) -> (i32, i32) {
    %c0_i32 = arith.constant 0 : i32
    %c0_i32_0 = arith.constant 0 : i32
    %c0_i32_1 = arith.constant 0 : i32
    return %c0_i32, %c0_i32_0 : i32, i32
  }
  func.func @transform_4(%arg0: i32) -> (i32, i32) {
    %c0_i32 = arith.constant 0 : i32
    %c0_i32_0 = arith.constant 0 : i32
    %c0_i32_1 = arith.constant 0 : i32
    return %c0_i32, %c0_i32_0 : i32, i32
  }
  func.func @transform_5(%arg0: i32) -> (i32, i32) {
    %c0_i32 = arith.constant 0 : i32
    %c0_i32_0 = arith.constant 0 : i32
    %c0_i32_1 = arith.constant 0 : i32
    return %c0_i32, %c0_i32_0 : i32, i32
  }
  func.func @transform_6(%arg0: i32) -> (i32, i32) {
    %c0_i32 = arith.constant 0 : i32
    %c0_i32_0 = arith.constant 0 : i32
    %c0_i32_1 = arith.constant 0 : i32
    return %c0_i32, %c0_i32_0 : i32, i32
  }
  func.func @transform_7(%arg0: i32) -> (i32, i32) {
    %c0_i32 = arith.constant 0 : i32
    %c0_i32_0 = arith.constant 0 : i32
    return %arg0, %c0_i32 : i32, i32
  }
}

</mosaic_0001>

<bundles_post_ra>
// kernel: fcdeep_forward.1
= control target key start
LH: loop header
LB: loop body
LE: loop exit
PB: predicated region body
PF: predicated region fallthrough
CT: control target
= control target key end

     0   :  { %12 = vsyncpa [#allocation3], 0  ;;  %s6406_s0 = inlined_call_operand.vmem [shape: bf16[16,784], index: 0, kind: input, shape index: {}]   ;;  %s6407_s1 = inlined_call_operand.hbm [shape: bf16[784,384], index: 1, kind: input, shape index: {}]   ;;  %s6408_s2 = inlined_call_operand.vmem [shape: bf16[384,384], index: 2, kind: input, shape index: {}]   ;;  %s6409_s3 = inlined_call_operand.hbm [shape: bf16[384,384], index: 3, kind: input, shape index: {}]   ;;  %s6410_s4 = inlined_call_operand.hbm [shape: bf16[384,384], index: 4, kind: input, shape index: {}]   ;;  %s6411_s5 = inlined_call_operand.vmem [shape: bf16[384,128], index: 5, kind: input, shape index: {}]   ;;  %s6412_s6 = inlined_call_operand.vmem [shape: bf16[128,128], index: 6, kind: input, shape index: {}]   ;;  %s6413_s7 = inlined_call_operand.hbm [shape: f32[16,128], index: 7, kind: output, shape index: {}]  }
   0x1   :  { %13 = vsyncpa [#allocation6], 0 }
   0x2   :  { %14 = vsyncpa [#allocation4], 0  ;;  %s36_s26 = sshll.u32 %s6409_s3, 4  ;;  %s5710_s27 = smov [#allocation5]   ;;  %s37_s26 = int_to_ptr.hbm [resolvable:$true] %s36_s26 }
   0x3   :  { %s38_s28 = sshll.u32 %s5710_s27, 4  ;;  %s21_s8 = sshll.u32 %s6407_s1, 4  ;;  %s39_s28 = int_to_ptr.vmem [resolvable:$true] %s38_s28  ;;  %s22_s8 = int_to_ptr.hbm [resolvable:$true] %s21_s8 }
   0x4   :  { %s5711_s9 = smov 192   ;;  %s5712_s10 = smov 12  }
   0x5   :  { %44 = dma.hbm_to_vmem [thread:$0]  %s37_s26, 9216, %s39_s28, [#allocation6], %s5711_s9, %s5711_s9, %s5712_s10  }
   0x6   :  { %s5713_s11 = smov [#allocation2]   ;;  %s49_s15 = sshll.u32 %s6410_s4, 4  ;;  %s50_s15 = int_to_ptr.hbm [resolvable:$true] %s49_s15 }
   0x7   :  { %s23_s12 = sshll.u32 %s5713_s11, 4  ;;  %s5714_s3 = smov [#allocation7]   ;;  %s24_s12 = int_to_ptr.vmem [resolvable:$true] %s23_s12 }
   0x8   :  { %29 = dma.hbm_to_vmem [thread:$0]  %s22_s8, 18816, %s24_s12, [#allocation3], %s5711_s9, %s5711_s9, %s5712_s10  }
   0x9   :  { %s51_s16 = sshll.u32 %s5714_s3, 4  ;;  %s52_s16 = int_to_ptr.vmem [resolvable:$true] %s51_s16 }
   0xa   :  { %57 = dma.hbm_to_vmem [thread:$0]  %s50_s15, 9216, %s52_s16, [#allocation6], %s5711_s9, %s5711_s9, %s5712_s10  }
   0xb   :  { %5704 = dma.done.wait [#allocation3], 18816  }
   0xc   :  { %5705 = vsyncadd [#allocation3], 4294948480 }
   0xd   :  { %5706 = dma.done.wait [#allocation6], 18432  }
   0xe   :  { %5707 = vsyncadd [#allocation6], 4294948864  ;;  %v3701_v0 = vld [vmem:[#allocation2 + $0xa8] sm:$0xf]  ;;  %v5227_v1 = vld [vmem:[#allocation2 + $0xb0] sm:$0xf0] }
   0xf   :  { %v3797_v2 = vld [vmem:[#allocation2 + $0x168] sm:$0xf]  ;;  %v3702_v3 = vor.u32 %v5227_v1, %v3701_v0  ;;  %v5251_v4 = vld [vmem:[#allocation2 + $0x170] sm:$0xf0]  ;;  %v3689_v11 = vld [vmem:[#allocation2 + $0x90] sm:$0xf] }
  0x10   :  { %v3893_v5 = vld [vmem:[#allocation2 + $0x228] sm:$0xf]  ;;  %v5275_v6 = vld [vmem:[#allocation2 + $0x230] sm:$0xf0]  ;;  %v3798_v7 = vor.u32 %v5251_v4, %v3797_v2  ;;  %v5224_v13 = vld [vmem:[#allocation2 + $0x98] sm:$0xf0] }
  0x11   :  { %v3894_v8 = vor.u32 %v5275_v6, %v3893_v5  ;;  %v3989_v9 = vld [vmem:[#allocation2 + $0x2e8] sm:$0xf]  ;;  %v5299_v10 = vld [vmem:[#allocation2 + $0x2f0] sm:$0xf0]  ;;  %1102 = vmatpush.bf16.msra.mxu0 %v3702_v3  ;;  %v3785_v14 = vld [vmem:[#allocation2 + $0x150] sm:$0xf]  ;;  %v3690_v16 = vor.u32 %v5224_v13, %v3689_v11 }
  0x12   :  { %v3990_v12 = vor.u32 %v5299_v10, %v3989_v9  ;;  %v5248_v15 = vld [vmem:[#allocation2 + $0x158] sm:$0xf0]  ;;  %1116 = vmatpush.bf16.msra.mxu1 %v3798_v7  ;;  %v3881_v18 = vld [vmem:[#allocation2 + $0x210] sm:$0xf]  ;;  %v3677_v23 = vld [vmem:[#allocation2 + $0x78] sm:$0xf] }
  0x13   :  { %1130 = vmatpush.bf16.msra.mxu2 %v3894_v8  ;;  %v3786_v17 = vor.u32 %v5248_v15, %v3785_v14  ;;  %v5272_v19 = vld [vmem:[#allocation2 + $0x218] sm:$0xf0]  ;;  %v3977_v20 = vld [vmem:[#allocation2 + $0x2d0] sm:$0xf]  ;;  %v5221_v24 = vld [vmem:[#allocation2 + $0x80] sm:$0xf0] }
  0x14   :  { %1144 = vmatpush.bf16.msra.mxu3 %v3990_v12  ;;  %v3882_v21 = vor.u32 %v5272_v19, %v3881_v18  ;;  %v5296_v22 = vld [vmem:[#allocation2 + $0x2d8] sm:$0xf0]  ;;  %v3773_v26 = vld [vmem:[#allocation2 + $0x138] sm:$0xf]  ;;  %v5245_v27 = vld [vmem:[#allocation2 + $0x140] sm:$0xf0]  ;;  %v3678_v29 = vor.u32 %v5221_v24, %v3677_v23 }
  0x15   :  { %v3978_v25 = vor.u32 %v5296_v22, %v3977_v20  ;;  %v3869_v28 = vld [vmem:[#allocation2 + $0x1f8] sm:$0xf]  ;;  %1103 = vmatpush.bf16.msra.mxu0 %v3690_v16  ;;  %v5269_v30 = vld [vmem:[#allocation2 + $0x200] sm:$0xf0]  ;;  %v3774_v33 = vor.u32 %v5245_v27, %v3773_v26  ;;  %v3665_v35 = vld [vmem:[#allocation2 + $0x60] sm:$0xf] }
  0x16   :  { %v3965_v31 = vld [vmem:[#allocation2 + $0x2b8] sm:$0xf]  ;;  %v5293_v32 = vld [vmem:[#allocation2 + $0x2c0] sm:$0xf0]  ;;  %1117 = vmatpush.bf16.msra.mxu1 %v3786_v17  ;;  %v3870_v34 = vor.u32 %v5269_v30, %v3869_v28  ;;  %v5218_v36 = vld [vmem:[#allocation2 + $0x68] sm:$0xf0] }
  0x17   :  { %1131 = vmatpush.bf16.msra.mxu2 %v3882_v21  ;;  %v3761_v37 = vld [vmem:[#allocation2 + $0x120] sm:$0xf]  ;;  %v3966_v38 = vor.u32 %v5293_v32, %v3965_v31  ;;  %v5242_v39 = vld [vmem:[#allocation2 + $0x128] sm:$0xf0]  ;;  %v3666_v44 = vor.u32 %v5218_v36, %v3665_v35  ;;  %v3653_v47 = vld [vmem:[#allocation2 + $0x48] sm:$0xf] }
  0x18   :  { %1145 = vmatpush.bf16.msra.mxu3 %v3978_v25  ;;  %v3857_v40 = vld [vmem:[#allocation2 + $0x1e0] sm:$0xf]  ;;  %v5266_v41 = vld [vmem:[#allocation2 + $0x1e8] sm:$0xf0]  ;;  %v3762_v45 = vor.u32 %v5242_v39, %v3761_v37  ;;  %v5215_v48 = vld [vmem:[#allocation2 + $0x50] sm:$0xf0] }
  0x19   :  { %v3953_v42 = vld [vmem:[#allocation2 + $0x2a0] sm:$0xf]  ;;  %v5290_v43 = vld [vmem:[#allocation2 + $0x2a8] sm:$0xf0]  ;;  %1104 = vmatpush.bf16.msra.mxu0 %v3678_v29  ;;  %v3858_v46 = vor.u32 %v5266_v41, %v3857_v40  ;;  %v3749_v49 = vld [vmem:[#allocation2 + $0x108] sm:$0xf]  ;;  %v3654_v56 = vor.u32 %v5215_v48, %v3653_v47 }
  0x1a   :  { %1118 = vmatpush.bf16.msra.mxu1 %v3774_v33  ;;  %v3954_v50 = vor.u32 %v5290_v43, %v3953_v42  ;;  %v5239_v51 = vld [vmem:[#allocation2 + $0x110] sm:$0xf0]  ;;  %v3845_v52 = vld [vmem:[#allocation2 + $0x1c8] sm:$0xf]  ;;  %v3641_v59 = vld [vmem:[#allocation2 + $0x30] sm:$0xf] }
  0x1b   :  { %1132 = vmatpush.bf16.msra.mxu2 %v3870_v34  ;;  %v5263_v53 = vld [vmem:[#allocation2 + $0x1d0] sm:$0xf0]  ;;  %v3941_v54 = vld [vmem:[#allocation2 + $0x288] sm:$0xf]  ;;  %v3750_v57 = vor.u32 %v5239_v51, %v3749_v49  ;;  %v5212_v60 = vld [vmem:[#allocation2 + $0x38] sm:$0xf0] }
  0x1c   :  { %1146 = vmatpush.bf16.msra.mxu3 %v3966_v38  ;;  %v5287_v55 = vld [vmem:[#allocation2 + $0x290] sm:$0xf0]  ;;  %v3846_v58 = vor.u32 %v5263_v53, %v3845_v52  ;;  %v3737_v61 = vld [vmem:[#allocation2 + $0xf0] sm:$0xf]  ;;  %v5236_v63 = vld [vmem:[#allocation2 + $0xf8] sm:$0xf0]  ;;  %v3642_v4 = vor.u32 %v5212_v60, %v3641_v59 }
  0x1d   :  { %1105 = vmatpush.bf16.msra.mxu0 %v3666_v44  ;;  %v3942_v62 = vor.u32 %v5287_v55, %v3941_v54  ;;  %v3833_v0 = vld [vmem:[#allocation2 + $0x1b0] sm:$0xf]  ;;  %v5260_v1 = vld [vmem:[#allocation2 + $0x1b8] sm:$0xf0]  ;;  %v3738_v5 = vor.u32 %v5236_v63, %v3737_v61  ;;  %v3629_v7 = vld [vmem:[#allocation2 + $0x18] sm:$0xf] }
  0x1e   :  { %1119 = vmatpush.bf16.msra.mxu1 %v3762_v45  ;;  %v3929_v2 = vld [vmem:[#allocation2 + $0x270] sm:$0xf]  ;;  %v5284_v3 = vld [vmem:[#allocation2 + $0x278] sm:$0xf0]  ;;  %v3834_v6 = vor.u32 %v5260_v1, %v3833_v0  ;;  %v5209_v8 = vld [vmem:[#allocation2 + $0x20] sm:$0xf0] }
  0x1f   :  { %1133 = vmatpush.bf16.msra.mxu2 %v3858_v46  ;;  %v3725_v9 = vld [vmem:[#allocation2 + $0xd8] sm:$0xf]  ;;  %v3930_v10 = vor.u32 %v5284_v3, %v3929_v2  ;;  %v5233_v11 = vld [vmem:[#allocation2 + $0xe0] sm:$0xf0]  ;;  %v3630_v16 = vor.u32 %v5209_v8, %v3629_v7  ;;  %v3617_v17 = vld [vmem:[#allocation2] sm:$0xf] }
  0x20   :  { %1147 = vmatpush.bf16.msra.mxu3 %v3954_v50  ;;  %v3821_v12 = vld [vmem:[#allocation2 + $0x198] sm:$0xf]  ;;  %v5257_v13 = vld [vmem:[#allocation2 + $0x1a0] sm:$0xf0]  ;;  %v5206_v18 = vld [vmem:[#allocation2 + $0x8] sm:$0xf0]  ;;  %v3726_v19 = vor.u32 %v5233_v11, %v3725_v9 }
  0x21   :  { %1106 = vmatpush.bf16.msra.mxu0 %v3654_v56  ;;  %v3917_v14 = vld [vmem:[#allocation2 + $0x258] sm:$0xf]  ;;  %v5281_v15 = vld [vmem:[#allocation2 + $0x260] sm:$0xf0]  ;;  %v3822_v20 = vor.u32 %v5257_v13, %v3821_v12  ;;  %v3713_v21 = vld [vmem:[#allocation2 + $0xc0] sm:$0xf]  ;;  %v3618_v31 = vor.u32 %v5206_v18, %v3617_v17 }
  0x22   :  { %1120 = vmatpush.bf16.msra.mxu1 %v3750_v57  ;;  %v5230_v22 = vld [vmem:[#allocation2 + $0xc8] sm:$0xf0]  ;;  %v3809_v23 = vld [vmem:[#allocation2 + $0x180] sm:$0xf]  ;;  %v3918_v24 = vor.u32 %v5281_v15, %v3917_v14  ;;  %v4085_v28 = vld [vmem:[#allocation2 + $0x3a8] sm:$0xf] }
  0x23   :  { %1134 = vmatpush.bf16.msra.mxu2 %v3846_v58  ;;  %v5254_v25 = vld [vmem:[#allocation2 + $0x188] sm:$0xf0]  ;;  %v3905_v26 = vld [vmem:[#allocation2 + $0x240] sm:$0xf]  ;;  %v5323_v29 = vld [vmem:[#allocation2 + $0x3b0] sm:$0xf0]  ;;  %v3714_v35 = vor.u32 %v5230_v22, %v3713_v21 }
  0x24   :  { %1148 = vmatpush.bf16.msra.mxu3 %v3942_v62  ;;  %v5278_v27 = vld [vmem:[#allocation2 + $0x248] sm:$0xf0]  ;;  %v4181_v30 = vld [vmem:[#allocation2 + $0x468] sm:$0xf]  ;;  %v5347_v32 = vld [vmem:[#allocation2 + $0x470] sm:$0xf0]  ;;  %v3810_v36 = vor.u32 %v5254_v25, %v3809_v23  ;;  %v4086_v41 = vor.u32 %v5323_v29, %v4085_v28 }
  0x25   :  { %1107 = vmatpush.bf16.msra.mxu0 %v3642_v4  ;;  %v5226_v33 = vld [vmem:[#allocation2 + $0xac] sm:$0xf]  ;;  %v3703_v34 = vld [vmem:[#allocation2 + $0xb4] sm:$0xf0]  ;;  %v4193_v37 = vld [vmem:[#allocation2 + $0x480] sm:$0xf]  ;;  %v3906_v40 = vor.u32 %v5278_v27, %v3905_v26  ;;  %v4182_v45 = vor.u32 %v5347_v32, %v4181_v30 }
  0x26   :  { %1121 = vmatpush.bf16.msra.mxu1 %v3738_v5  ;;  %v5350_v38 = vld [vmem:[#allocation2 + $0x488] sm:$0xf0]  ;;  %v3597_v39 = vld [vmem:[%s6406_s0 + $0x8] sm:$0xf]  ;;  %v5202_v42 = vld [vmem:[%s6406_s0 + $0x20] sm:$0xf0]  ;;  %v3706_v46 = vor.u32 %v5226_v33, %v3703_v34 }
  0x27   :  { %1135 = vmatpush.bf16.msra.mxu2 %v3834_v6  ;;  %v5250_v43 = vld [vmem:[#allocation2 + $0x16c] sm:$0xf]  ;;  %v3799_v44 = vld [vmem:[#allocation2 + $0x174] sm:$0xf0]  ;;  %v4073_v47 = vld [vmem:[#allocation2 + $0x390] sm:$0xf]  ;;  %v4194_v50 = vor.u32 %v5350_v38, %v4193_v37  ;;  %v5773_v54 = vor.u32 %v5202_v42, %v3597_v39 }
  0x28   :  { %1149 = vmatpush.bf16.msra.mxu3 %v3930_v10  ;;  %v5320_v48 = vld [vmem:[#allocation2 + $0x398] sm:$0xf0]  ;;  %v4169_v49 = vld [vmem:[#allocation2 + $0x450] sm:$0xf]  ;;  %v5223_v52 = vld [vmem:[#allocation2 + $0x94] sm:$0xf]  ;;  %v3802_v56 = vor.u32 %v5250_v43, %v3799_v44 }
  0x29   :  { %1108 = vmatpush.bf16.msra.mxu0 %v3630_v16  ;;  %v5344_v51 = vld [vmem:[#allocation2 + $0x458] sm:$0xf0]  ;;  %v3691_v53 = vld [vmem:[#allocation2 + $0x9c] sm:$0xf0]  ;;  %v4074_v57 = vor.u32 %v5320_v48, %v4073_v47  ;;  %v5247_v58 = vld [vmem:[#allocation2 + $0x154] sm:$0xf] }
  0x2a   :  { %1122 = vmatpush.bf16.msra.mxu1 %v3726_v19  ;;  %v3589_v55 = vld [vmem:[%s6406_s0] sm:$0xf]  ;;  %v5201_v60 = vld [vmem:[%s6406_s0 + $0x18] sm:$0xf0]  ;;  %v4170_v61 = vor.u32 %v5344_v51, %v4169_v49  ;;  %v3694_v62 = vor.u32 %v5223_v52, %v3691_v53  ;;  %v4061_v63 = vld [vmem:[#allocation2 + $0x378] sm:$0xf] }
  0x2b   :  { %1136 = vmatpush.bf16.msra.mxu2 %v3822_v20  ;;  %v3787_v59 = vld [vmem:[#allocation2 + $0x15c] sm:$0xf0]  ;;  %v5317_v0 = vld [vmem:[#allocation2 + $0x380] sm:$0xf0]  ;;  %v4157_v1 = vld [vmem:[#allocation2 + $0x438] sm:$0xf]  ;;  %v5781_v2 = vor.u32 %v5201_v60, %v3589_v55 }
  0x2c   :  { %1150 = vmatpush.bf16.msra.mxu3 %v3918_v24  ;;  %v5341_v3 = vld [vmem:[#allocation2 + $0x440] sm:$0xf0]  ;;  %v5220_v4 = vld [vmem:[#allocation2 + $0x7c] sm:$0xf]  ;;  %v3679_v5 = vld [vmem:[#allocation2 + $0x84] sm:$0xf0]  ;;  %v3790_v9 = vor.u32 %v5247_v58, %v3787_v59  ;;  %v4062_v10 = vor.u32 %v5317_v0, %v4061_v63 }
  0x2d   :  { %1109 = vmatpush.bf16.msra.mxu0 %v3618_v31  ;;  %v5244_v6 = vld [vmem:[#allocation2 + $0x13c] sm:$0xf]  ;;  %v5198_v7 = vld [vmem:[%s6406_s0 + $0x4] sm:$0xf]  ;;  %v3591_v8 = vld [vmem:[%s6406_s0 + $0x1c] sm:$0xf0]  ;;  %v4158_v15 = vor.u32 %v5341_v3, %v4157_v1  ;;  %v3682_v16 = vor.u32 %v5220_v4, %v3679_v5 }
  0x2e   :  { %1123 = vmatpush.bf16.msra.mxu1 %v3714_v35  ;;  %v3775_v11 = vld [vmem:[#allocation2 + $0x144] sm:$0xf0]  ;;  %v4049_v12 = vld [vmem:[#allocation2 + $0x360] sm:$0xf]  ;;  %v5314_v13 = vld [vmem:[#allocation2 + $0x368] sm:$0xf0]  ;;  %v5791_v14 = vor.u32 %v5198_v7, %v3591_v8 }
  0x2f   :  { %1137 = vmatpush.bf16.msra.mxu2 %v3810_v36  ;;  %v4145_v17 = vld [vmem:[#allocation2 + $0x420] sm:$0xf]  ;;  %v5338_v18 = vld [vmem:[#allocation2 + $0x428] sm:$0xf0]  ;;  %v5217_v19 = vld [vmem:[#allocation2 + $0x64] sm:$0xf]  ;;  %v3778_v24 = vor.u32 %v5244_v6, %v3775_v11  ;;  %v4050_v25 = vor.u32 %v5314_v13, %v4049_v12 }
  0x30   :  { %1151 = vmatpush.bf16.msra.mxu3 %v3906_v40  ;;  %1110 = vmatmul.bf16.vlgmr.msra.gmra.mxu0 %v5781_v2  ;;  %v3667_v20 = vld [vmem:[#allocation2 + $0x6c] sm:$0xf0]  ;;  %v5199_v21 = vld [vmem:[%s6406_s0 + $0xc] sm:$0xf]  ;;  %v3599_v22 = vld [vmem:[%s6406_s0 + $0x24] sm:$0xf0]  ;;  %v4146_v28 = vor.u32 %v5338_v18, %v4145_v17 }
  0x31   :  { %1158 = vmatpush.bf16.msrb.mxu0 %v4086_v41  ;;  %1124 = vmatmul.bf16.vlgmr.msra.gmra.mxu1 %v5791_v14  ;;  %v5800_v23 = vor.u32 %v5199_v21, %v3599_v22  ;;  %v5241_v26 = vld [vmem:[#allocation2 + $0x124] sm:$0xf]  ;;  %v3763_v27 = vld [vmem:[#allocation2 + $0x12c] sm:$0xf0]  ;;  %v3670_v29 = vor.u32 %v5217_v19, %v3667_v20  ;;  %v4037_v30 = vld [vmem:[#allocation2 + $0x348] sm:$0xf] }
  0x32   :  { %1172 = vmatpush.bf16.msrb.mxu1 %v4182_v45  ;;  %1138 = vmatmul.bf16.vlgmr.msra.gmra.mxu2 %v5773_v54  ;;  %v5311_v31 = vld [vmem:[#allocation2 + $0x350] sm:$0xf0]  ;;  %v4133_v32 = vld [vmem:[#allocation2 + $0x408] sm:$0xf]  ;;  %v5214_v34 = vld [vmem:[#allocation2 + $0x4c] sm:$0xf]  ;;  %v3766_v37 = vor.u32 %v5241_v26, %v3763_v27 }
  0x33   :  { %1193 = vmatpush.bf16.msrb.mxu2 %v4194_v50  ;;  %v5335_v33 = vld [vmem:[#allocation2 + $0x410] sm:$0xf0]  ;;  %v3655_v35 = vld [vmem:[#allocation2 + $0x54] sm:$0xf0]  ;;  %1152 = vmatmul.bf16.vlgmr.msra.gmra.mxu3 %v5800_v23  ;;  %v5238_v36 = vld [vmem:[#allocation2 + $0x10c] sm:$0xf]  ;;  %v4038_v38 = vor.u32 %v5311_v31, %v4037_v30 }
  0x34   :  { %1200 = vmatpush.bf16.msrb.mxu3 %v3706_v46  ;;  %v3751_v39 = vld [vmem:[#allocation2 + $0x114] sm:$0xf0]  ;;  %v5204_v41 = vld [vmem:[%s6406_s0 + $0x30] sm:$0xf0]  ;;  %v4134_v42 = vor.u32 %v5335_v33, %v4133_v32  ;;  %v3658_v43 = vor.u32 %v5214_v34, %v3655_v35  ;;  %v4025_v44 = vld [vmem:[#allocation2 + $0x330] sm:$0xf] }
  0x35   :  { %1159 = vmatpush.bf16.msrb.mxu0 %v4074_v57  ;;  %v3613_v40 = vld [vmem:[%s6406_s0 + $0x18] sm:$0xf]  ;;  %v5308_v45 = vld [vmem:[#allocation2 + $0x338] sm:$0xf0]  ;;  %v4121_v46 = vld [vmem:[#allocation2 + $0x3f0] sm:$0xf]  ;;  %v3754_v51 = vor.u32 %v5238_v36, %v3751_v39 }
  0x36   :  { %1173 = vmatpush.bf16.msrb.mxu1 %v4170_v61  ;;  %v5332_v47 = vld [vmem:[#allocation2 + $0x3f8] sm:$0xf0]  ;;  %v5211_v48 = vld [vmem:[#allocation2 + $0x34] sm:$0xf]  ;;  %v3643_v49 = vld [vmem:[#allocation2 + $0x3c] sm:$0xf0]  ;;  %v5809_v50 = vor.u32 %v5204_v41, %v3613_v40  ;;  %v4026_v52 = vor.u32 %v5308_v45, %v4025_v44 }
  0x37   :  { %1214 = vmatpush.bf16.msra.mxu2 %v3802_v56  ;;  %vm1098_vm0 = vcmask 130048   ;;  %v5235_v53 = vld [vmem:[#allocation2 + $0xf4] sm:$0xf]  ;;  %v3739_v55 = vld [vmem:[#allocation2 + $0xfc] sm:$0xf0]  ;;  %v4122_v56 = vor.u32 %v5332_v47, %v4121_v46  ;;  %v3646_v57 = vor.u32 %v5211_v48, %v3643_v49  ;;  %s5715_s16 = smov [#allocation8]  }
  0x38   :  { %1201 = vmatpush.bf16.msrb.mxu3 %v3694_v62  ;;  %v4013_v58 = vld [vmem:[#allocation2 + $0x318] sm:$0xf]  ;;  %v5305_v59 = vld [vmem:[#allocation2 + $0x320] sm:$0xf0]  ;;  %v5208_v62 = vld [vmem:[#allocation2 + $0x1c] sm:$0xf]  ;;  %v3742_v3 = vor.u32 %v5235_v53, %v3739_v55 }
  0x39   :  { %1160 = vmatpush.bf16.msrb.mxu0 %v4062_v10  ;;  %v4109_v60 = vld [vmem:[#allocation2 + $0x3d8] sm:$0xf]  ;;  %v5329_v61 = vld [vmem:[#allocation2 + $0x3e0] sm:$0xf0]  ;;  %v3631_v63 = vld [vmem:[#allocation2 + $0x24] sm:$0xf0]  ;;  %v4014_v4 = vor.u32 %v5305_v59, %v4013_v58 }
  0x3a   :  { %1174 = vmatpush.bf16.msrb.mxu1 %v4158_v15  ;;  %v5232_v0 = vld [vmem:[#allocation2 + $0xdc] sm:$0xf]  ;;  %v3727_v1 = vld [vmem:[#allocation2 + $0xe4] sm:$0xf0]  ;;  %v4001_v5 = vld [vmem:[#allocation2 + $0x300] sm:$0xf]  ;;  %v4110_v8 = vor.u32 %v5329_v61, %v4109_v60 }
  0x3b   :  { %1215 = vmatpush.bf16.msra.mxu2 %v3790_v9  ;;  %v5302_v6 = vld [vmem:[#allocation2 + $0x308] sm:$0xf0]  ;;  %v4097_v7 = vld [vmem:[#allocation2 + $0x3c0] sm:$0xf]  ;;  %v3634_v9 = vor.u32 %v5208_v62, %v3631_v63  ;;  %v5205_v11 = vld [vmem:[#allocation2 + $0x4] sm:$0xf]  ;;  %v3730_v20 = vor.u32 %v5232_v0, %v3727_v1 }
  0x3c   :  { %1202 = vmatpush.bf16.msrb.mxu3 %v3682_v16  ;;  %v5326_v10 = vld [vmem:[#allocation2 + $0x3c8] sm:$0xf0]  ;;  %v3619_v12 = vld [vmem:[#allocation2 + $0xc] sm:$0xf0]  ;;  %v3895_v15 = vld [vmem:[#allocation2 + $0x234] sm:$0xf0]  ;;  %v4002_v21 = vor.u32 %v5302_v6, %v4001_v5 }
  0x3d   :  { %1161 = vmatpush.bf16.msrb.mxu0 %v4050_v25  ;;  %v5274_v13 = vld [vmem:[#allocation2 + $0x22c] sm:$0xf]  ;;  %v3991_v17 = vld [vmem:[#allocation2 + $0x2f4] sm:$0xf0]  ;;  %v3605_v22 = vld [vmem:[%s6406_s0 + $0x10] sm:$0xf]  ;;  %v4098_v26 = vor.u32 %v5326_v10, %v4097_v7  ;;  %v3622_v27 = vor.u32 %v5205_v11, %v3619_v12 }
  0x3e   :  { %1175 = vmatpush.bf16.msrb.mxu1 %v4146_v28  ;;  %v5298_v16 = vld [vmem:[#allocation2 + $0x2ec] sm:$0xf]  ;;  %v4087_v19 = vld [vmem:[#allocation2 + $0x3b4] sm:$0xf0]  ;;  %v5229_v25 = vld [vmem:[#allocation2 + $0xc4] sm:$0xf]  ;;  %v3898_v31 = vor.u32 %v5274_v13, %v3895_v15 }
  0x3f   :  { %1216 = vmatpush.bf16.msra.mxu2 %v3778_v24  ;;  %v5322_v18 = vld [vmem:[#allocation2 + $0x3ac] sm:$0xf]  ;;  %v3715_v28 = vld [vmem:[#allocation2 + $0xcc] sm:$0xf0]  ;;  %v3994_v32 = vor.u32 %v5298_v16, %v3991_v17  ;;  %v4183_v34 = vld [vmem:[#allocation2 + $0x474] sm:$0xf0] }
  0x40   :  { %1203 = vmatpush.bf16.msrb.mxu3 %v3670_v29  ;;  %v5203_v24 = vld [vmem:[%s6406_s0 + $0x28] sm:$0xf0]  ;;  %v5200_v29 = vld [vmem:[%s6406_s0 + $0x14] sm:$0xf]  ;;  %v3607_v30 = vld [vmem:[%s6406_s0 + $0x2c] sm:$0xf0]  ;;  %v4090_v36 = vor.u32 %v5322_v18, %v4087_v19  ;;  %v3718_v41 = vor.u32 %v5229_v25, %v3715_v28 }
  0x41   :  { %1162 = vmatpush.bf16.msrb.mxu0 %v4038_v38  ;;  %v5346_v33 = vld [vmem:[#allocation2 + $0x46c] sm:$0xf]  ;;  %v5271_v35 = vld [vmem:[#allocation2 + $0x214] sm:$0xf]  ;;  %v3883_v38 = vld [vmem:[#allocation2 + $0x21c] sm:$0xf0] }
  0x42   :  { %1176 = vmatpush.bf16.msrb.mxu1 %v4134_v42  ;;  %4203 = vmatmul.msk.bf16.vlgmr.msrb.gmra.mxu2 %vm1098_vm0, %v5809_v50  ;;  %v5295_v39 = vld [vmem:[#allocation2 + $0x2d4] sm:$0xf]  ;;  %v3979_v40 = vld [vmem:[#allocation2 + $0x2dc] sm:$0xf0]  ;;  %v5827_v42 = vor.u32 %v5200_v29, %v3607_v30  ;;  %v4186_v45 = vor.u32 %v5346_v33, %v4183_v34  ;;  %v3886_v46 = vor.u32 %v5271_v35, %v3883_v38  ;;  %v3871_v53 = vld [vmem:[#allocation2 + $0x204] sm:$0xf0] }
  0x43   :  { %1217 = vmatpush.bf16.msra.mxu2 %v3766_v37  ;;  %v5825_v37 = vor.u32 %v5203_v24, %v3605_v22  ;;  %v4075_v44 = vld [vmem:[#allocation2 + $0x39c] sm:$0xf0]  ;;  %v3982_v47 = vor.u32 %v5295_v39, %v3979_v40  ;;  %v5343_v48 = vld [vmem:[#allocation2 + $0x454] sm:$0xf]  ;;  %v5292_v55 = vld [vmem:[#allocation2 + $0x2bc] sm:$0xf] }
  0x44   :  { %1204 = vmatpush.bf16.msrb.mxu3 %v3658_v43  ;;  %v5319_v43 = vld [vmem:[#allocation2 + $0x394] sm:$0xf]  ;;  %v4171_v49 = vld [vmem:[#allocation2 + $0x45c] sm:$0xf0]  ;;  %v4063_v58 = vld [vmem:[#allocation2 + $0x384] sm:$0xf0] }
  0x45   :  { %1163 = vmatpush.bf16.msrb.mxu0 %v4026_v52  ;;  %v4078_v52 = vor.u32 %v5319_v43, %v4075_v44  ;;  %v4174_v59 = vor.u32 %v5343_v48, %v4171_v49  ;;  %v5340_v62 = vld [vmem:[#allocation2 + $0x43c] sm:$0xf]  ;;  %v4159_v63 = vld [vmem:[#allocation2 + $0x444] sm:$0xf0]  ;;  %v5265_v0 = vld [vmem:[#allocation2 + $0x1e4] sm:$0xf] }
  0x46   :  { %1177 = vmatpush.bf16.msrb.mxu1 %v4122_v56  ;;  %v3967_v56 = vld [vmem:[#allocation2 + $0x2c4] sm:$0xf0]  ;;  %v3955_v5 = vld [vmem:[#allocation2 + $0x2ac] sm:$0xf0]  ;;  %v5313_v6 = vld [vmem:[#allocation2 + $0x364] sm:$0xf] }
  0x47   :  { %1218 = vmatpush.bf16.msra.mxu2 %v3754_v51  ;;  %v5268_v51 = vld [vmem:[#allocation2 + $0x1fc] sm:$0xf]  ;;  %v3970_v61 = vor.u32 %v5292_v55, %v3967_v56  ;;  %v4051_v7 = vld [vmem:[#allocation2 + $0x36c] sm:$0xf0]  ;;  %v5337_v11 = vld [vmem:[#allocation2 + $0x424] sm:$0xf] }
  0x48   :  { %1205 = vmatpush.bf16.msrb.mxu3 %v3646_v57  ;;  %v5316_v57 = vld [vmem:[#allocation2 + $0x37c] sm:$0xf]  ;;  %v3874_v60 = vor.u32 %v5268_v51, %v3871_v53  ;;  %v4147_v12 = vld [vmem:[#allocation2 + $0x42c] sm:$0xf0]  ;;  %v5262_v13 = vld [vmem:[#allocation2 + $0x1cc] sm:$0xf]  ;;  %v4054_v15 = vor.u32 %v5313_v6, %v4051_v7 }
  0x49   :  { %1164 = vmatpush.bf16.msrb.mxu0 %v4014_v4  ;;  %v4066_v1 = vor.u32 %v5316_v57, %v4063_v58  ;;  %v5289_v4 = vld [vmem:[#allocation2 + $0x2a4] sm:$0xf]  ;;  %v3847_v16 = vld [vmem:[#allocation2 + $0x1d4] sm:$0xf0]  ;;  %v5286_v17 = vld [vmem:[#allocation2 + $0x28c] sm:$0xf] }
  0x4a   :  { %1178 = vmatpush.bf16.msrb.mxu1 %v4110_v8  ;;  %v4162_v8 = vor.u32 %v5340_v62, %v4159_v63  ;;  %v3958_v10 = vor.u32 %v5289_v4, %v3955_v5  ;;  %v3943_v18 = vld [vmem:[#allocation2 + $0x294] sm:$0xf0]  ;;  %v5310_v19 = vld [vmem:[#allocation2 + $0x34c] sm:$0xf]  ;;  %v3850_v22 = vor.u32 %v5262_v13, %v3847_v16  ;;  %v3835_v29 = vld [vmem:[#allocation2 + $0x1bc] sm:$0xf0] }
  0x4b   :  { %1219 = vmatpush.bf16.msra.mxu2 %v3742_v3  ;;  %v3859_v3 = vld [vmem:[#allocation2 + $0x1ec] sm:$0xf0]  ;;  %v3946_v24 = vor.u32 %v5286_v17, %v3943_v18  ;;  %v5334_v25 = vld [vmem:[#allocation2 + $0x40c] sm:$0xf]  ;;  %v5283_v30 = vld [vmem:[#allocation2 + $0x274] sm:$0xf] }
  0x4c   :  { %1206 = vmatpush.bf16.msrb.mxu3 %v3634_v9  ;;  %v3862_v9 = vor.u32 %v5265_v0, %v3859_v3  ;;  %v4027_v33 = vld [vmem:[#allocation2 + $0x33c] sm:$0xf0]  ;;  %v5331_v38 = vld [vmem:[#allocation2 + $0x3f4] sm:$0xf]  ;;  %v5256_v40 = vld [vmem:[#allocation2 + $0x19c] sm:$0xf] }
  0x4d   :  { %1165 = vmatpush.bf16.msrb.mxu0 %v4002_v21  ;;  %v4150_v21 = vor.u32 %v5337_v11, %v4147_v12  ;;  %v4123_v39 = vld [vmem:[#allocation2 + $0x3fc] sm:$0xf0]  ;;  %v3823_v43 = vld [vmem:[#allocation2 + $0x1a4] sm:$0xf0]  ;;  %v5280_v44 = vld [vmem:[#allocation2 + $0x25c] sm:$0xf] }
  0x4e   :  { %1179 = vmatpush.bf16.msrb.mxu1 %v4098_v26  ;;  %v4135_v26 = vld [vmem:[#allocation2 + $0x414] sm:$0xf0]  ;;  %v4126_v48 = vor.u32 %v5331_v38, %v4123_v39  ;;  %v5328_v49 = vld [vmem:[#allocation2 + $0x3dc] sm:$0xf]  ;;  %v4111_v51 = vld [vmem:[#allocation2 + $0x3e4] sm:$0xf0] }
  0x4f   :  { %1220 = vmatpush.bf16.msra.mxu2 %v3730_v20  ;;  %v4039_v20 = vld [vmem:[#allocation2 + $0x354] sm:$0xf0]  ;;  %v4138_v34 = vor.u32 %v5334_v25, %v4135_v26  ;;  %v5253_v55 = vld [vmem:[#allocation2 + $0x184] sm:$0xf]  ;;  %v3811_v56 = vld [vmem:[#allocation2 + $0x18c] sm:$0xf0] }
  0x50   :  { %1207 = vmatpush.bf16.msrb.mxu3 %v3622_v27  ;;  %1166 = vmatmul.bf16.vlgmr.msrb.gmra.mxu0 %v5825_v37  ;;  %v5259_v27 = vld [vmem:[#allocation2 + $0x1b4] sm:$0xf]  ;;  %v4042_v28 = vor.u32 %v5310_v19, %v4039_v20  ;;  %v5277_v57 = vld [vmem:[#allocation2 + $0x244] sm:$0xf]  ;;  %v3709_v62 = vld [vmem:[#allocation2 + $0xb0] sm:$0xf]  ;;  %v3814_v6 = vor.u32 %v5253_v55, %v3811_v56 }
  0x51   :  { %1228 = vmatpush.bf16.msra.mxu0 %v3898_v31  ;;  %1180 = vmatmul.bf16.vlgmr.msrb.gmra.mxu1 %v5827_v42  ;;  %v3931_v31 = vld [vmem:[#allocation2 + $0x27c] sm:$0xf0]  ;;  %v3838_v35 = vor.u32 %v5259_v27, %v3835_v29  ;;  %v5228_v63 = vld [vmem:[#allocation2 + $0xb8] sm:$0xf0]  ;;  %v5349_v0 = vld [vmem:[#allocation2 + $0x484] sm:$0xf] }
  0x52   :  { %1242 = vmatpush.bf16.msra.mxu1 %v3994_v32  ;;  %v5307_v32 = vld [vmem:[#allocation2 + $0x334] sm:$0xf]  ;;  %v4195_v3 = vld [vmem:[#allocation2 + $0x48c] sm:$0xf0]  ;;  %v5276_v5 = vld [vmem:[#allocation2 + $0x238] sm:$0xf0]  ;;  %v3710_v11 = vor.u32 %v5228_v63, %v3709_v62 }
  0x53   :  { %1221 = vmatpush.bf16.msra.mxu2 %v3718_v41  ;;  %1208 = vmatmul.bf16.vlgmr.msrb.gmra.mxu3 %v5781_v2  ;;  %v4030_v41 = vor.u32 %v5307_v32, %v4027_v33  ;;  %v3901_v4 = vld [vmem:[#allocation2 + $0x230] sm:$0xf]  ;;  %v4198_v13 = vor.u32 %v5349_v0, %v4195_v3  ;;  %v3697_v16 = vld [vmem:[#allocation2 + $0x98] sm:$0xf]  ;;  %v5225_v17 = vld [vmem:[#allocation2 + $0xa0] sm:$0xf0] }
  0x54   :  { %1256 = vmatpush.bf16.msra.mxu3 %v4090_v36  ;;  %v3934_v36 = vor.u32 %v5283_v30, %v3931_v31  ;;  %v3805_v12 = vld [vmem:[#allocation2 + $0x170] sm:$0xf]  ;;  %v3902_v18 = vor.u32 %v5276_v5, %v3901_v4  ;;  %v3889_v20 = vld [vmem:[#allocation2 + $0x218] sm:$0xf]  ;;  %v3698_v26 = vor.u32 %v5225_v17, %v3697_v16  ;;  %v3685_v29 = vld [vmem:[#allocation2 + $0x80] sm:$0xf] }
  0x55   :  { %1229 = vmatpush.bf16.msra.mxu0 %v3886_v46  ;;  %v5304_v46 = vld [vmem:[#allocation2 + $0x31c] sm:$0xf]  ;;  %v3793_v27 = vld [vmem:[#allocation2 + $0x158] sm:$0xf]  ;;  %v5222_v30 = vld [vmem:[#allocation2 + $0x88] sm:$0xf0] }
  0x56   :  { %1243 = vmatpush.bf16.msra.mxu1 %v3982_v47  ;;  %1222 = vmatmul.bf16.vlgmr.msra.gmra.mxu2 %v5791_v14  ;;  %v4015_v47 = vld [vmem:[#allocation2 + $0x324] sm:$0xf0]  ;;  %v3877_v33 = vld [vmem:[#allocation2 + $0x200] sm:$0xf]  ;;  %v3686_v39 = vor.u32 %v5222_v30, %v3685_v29  ;;  %v5243_v56 = vld [vmem:[#allocation2 + $0x130] sm:$0xf0] }
  0x57   :  { %1270 = vmatpush.bf16.msrb.mxu2 %v4186_v45  ;;  %v3919_v45 = vld [vmem:[#allocation2 + $0x264] sm:$0xf0]  ;;  %v4018_v58 = vor.u32 %v5304_v46, %v4015_v47  ;;  %v5264_v62 = vld [vmem:[#allocation2 + $0x1d8] sm:$0xf0]  ;;  %v5291_v0 = vld [vmem:[#allocation2 + $0x2b0] sm:$0xf0] }
  0x58   :  { %1257 = vmatpush.bf16.msra.mxu3 %v4078_v52  ;;  %v3826_v52 = vor.u32 %v5256_v40, %v3823_v43  ;;  %v3922_v53 = vor.u32 %v5280_v44, %v3919_v45  ;;  %v3781_v40 = vld [vmem:[#allocation2 + $0x140] sm:$0xf]  ;;  %v3673_v43 = vld [vmem:[#allocation2 + $0x68] sm:$0xf]  ;;  %v5219_v44 = vld [vmem:[#allocation2 + $0x70] sm:$0xf0] }
  0x59   :  { %1230 = vmatpush.bf16.msra.mxu0 %v3874_v60  ;;  %v5301_v60 = vld [vmem:[#allocation2 + $0x304] sm:$0xf]  ;;  %v3865_v47 = vld [vmem:[#allocation2 + $0x1e8] sm:$0xf]  ;;  %v3757_v4 = vld [vmem:[#allocation2 + $0x110] sm:$0xf] }
  0x5a   :  { %1244 = vmatpush.bf16.msra.mxu1 %v3970_v61  ;;  %v4003_v61 = vld [vmem:[#allocation2 + $0x30c] sm:$0xf0]  ;;  %v3769_v55 = vld [vmem:[#allocation2 + $0x128] sm:$0xf]  ;;  %v5240_v5 = vld [vmem:[#allocation2 + $0x118] sm:$0xf0] }
  0x5b   :  { %1271 = vmatpush.bf16.msrb.mxu2 %v4174_v59  ;;  %v3907_v59 = vld [vmem:[#allocation2 + $0x24c] sm:$0xf0]  ;;  %v3961_v63 = vld [vmem:[#allocation2 + $0x2a8] sm:$0xf]  ;;  %v3745_v17 = vld [vmem:[#allocation2 + $0xf8] sm:$0xf] }
  0x5c   :  { %1258 = vmatpush.bf16.msra.mxu3 %v4066_v1  ;;  %v4114_v1 = vor.u32 %v5328_v49, %v4111_v51  ;;  %v3910_v7 = vor.u32 %v5277_v57, %v3907_v59  ;;  %v3973_v49 = vld [vmem:[#allocation2 + $0x2c0] sm:$0xf]  ;;  %v5294_v51 = vld [vmem:[#allocation2 + $0x2c8] sm:$0xf0]  ;;  %v3661_v57 = vld [vmem:[#allocation2 + $0x50] sm:$0xf] }
  0x5d   :  { %1231 = vmatpush.bf16.msra.mxu0 %v3862_v9  ;;  %v4099_v9 = vld [vmem:[#allocation2 + $0x3cc] sm:$0xf0]  ;;  %v3733_v30 = vld [vmem:[#allocation2 + $0xe0] sm:$0xf]  ;;  %s3571_s1 = sshll.u32 %s5715_s16, 4  ;;  %s3573_s0 = sshll.u32 %s6413_s7, 4  ;;  %s3572_s1 = int_to_ptr.vmem [resolvable:$true] %s3571_s1  ;;  %s3574_s0 = int_to_ptr.hbm [resolvable:$true] %s3573_s0 }
  0x5e   :  { %1245 = vmatpush.bf16.msra.mxu1 %v3958_v10  ;;  %v4006_v10 = vor.u32 %v5301_v60, %v4003_v61  ;;  %v3974_v60 = vor.u32 %v5294_v51, %v3973_v49  ;;  %v3853_v61 = vld [vmem:[#allocation2 + $0x1d0] sm:$0xf]  ;;  %v3721_v49 = vld [vmem:[#allocation2 + $0xc8] sm:$0xf]  ;;  %v5231_v51 = vld [vmem:[#allocation2 + $0xd0] sm:$0xf0] }
  0x5f   :  { %1272 = vmatpush.bf16.msrb.mxu2 %v4162_v8  ;;  %v5325_v8 = vld [vmem:[#allocation2 + $0x3c4] sm:$0xf]  ;;  %s5716_s17 = smov 128   ;;  %s5717_s18 = smov 8  }
  0x60   :  { %1259 = vmatpush.bf16.msra.mxu3 %v4054_v15  ;;  %v5252_v15 = vld [vmem:[#allocation2 + $0x178] sm:$0xf0]  ;;  %v4102_v19 = vor.u32 %v5325_v8, %v4099_v9  ;;  %v3854_v8 = vor.u32 %v5264_v62, %v3853_v61  ;;  %v3962_v9 = vor.u32 %v5291_v0, %v3961_v63  ;;  %v5279_v61 = vld [vmem:[#allocation2 + $0x250] sm:$0xf0]  ;;  %v3722_v62 = vor.u32 %v5231_v51, %v3721_v49 }
  0x61   :  { %1232 = vmatpush.bf16.msra.mxu0 %v3850_v22  ;;  %v3997_v22 = vld [vmem:[#allocation2 + $0x2f0] sm:$0xf]  ;;  %v3806_v25 = vor.u32 %v5252_v15, %v3805_v12  ;;  %v3758_v15 = vor.u32 %v5240_v5, %v3757_v4  ;;  %v4069_v4 = vld [vmem:[#allocation2 + $0x380] sm:$0xf]  ;;  %v5318_v5 = vld [vmem:[#allocation2 + $0x388] sm:$0xf0] }
  0x62   :  { %1246 = vmatpush.bf16.msra.mxu1 %v3946_v24  ;;  %v5300_v24 = vld [vmem:[#allocation2 + $0x2f8] sm:$0xf0]  ;;  %v3949_v12 = vld [vmem:[#allocation2 + $0x290] sm:$0xf]  ;;  %v5370_v51 = vld [vmem:[%s6408_s2 + $0x94] sm:$0xf] }
  0x63   :  { %1273 = vmatpush.bf16.msrb.mxu2 %v4150_v21  ;;  %v5273_v21 = vld [vmem:[#allocation2 + $0x220] sm:$0xf0]  ;;  %v3998_v32 = vor.u32 %v5300_v24, %v3997_v22  ;;  %v3829_v24 = vld [vmem:[#allocation2 + $0x1a0] sm:$0xf] }
  0x64   :  { %1260 = vmatpush.bf16.msra.mxu3 %v4042_v28  ;;  %v5249_v28 = vld [vmem:[#allocation2 + $0x160] sm:$0xf0]  ;;  %v3890_v31 = vor.u32 %v5273_v21, %v3889_v20  ;;  %v5210_v20 = vld [vmem:[#allocation2 + $0x28] sm:$0xf0] }
  0x65   :  { %1233 = vmatpush.bf16.msra.mxu0 %v3838_v35  ;;  %v3985_v35 = vld [vmem:[#allocation2 + $0x2d8] sm:$0xf]  ;;  %v3794_v38 = vor.u32 %v5249_v28, %v3793_v27  ;;  %v5285_v27 = vld [vmem:[#allocation2 + $0x280] sm:$0xf0] }
  0x66   :  { %1247 = vmatpush.bf16.msra.mxu1 %v3934_v36  ;;  %v5297_v36 = vld [vmem:[#allocation2 + $0x2e0] sm:$0xf0] }
  0x67   :  { %1274 = vmatpush.bf16.msrb.mxu2 %v4138_v34  ;;  %v5270_v34 = vld [vmem:[#allocation2 + $0x208] sm:$0xf0]  ;;  %v3986_v46 = vor.u32 %v5297_v36, %v3985_v35  ;;  %v5324_v35 = vld [vmem:[#allocation2 + $0x3b8] sm:$0xf0] }
  0x68   :  { %1261 = vmatpush.bf16.msra.mxu3 %v4030_v41  ;;  %v5246_v41 = vld [vmem:[#allocation2 + $0x148] sm:$0xf0]  ;;  %v3878_v45 = vor.u32 %v5270_v34, %v3877_v33  ;;  %v5207_v33 = vld [vmem:[#allocation2 + $0x10] sm:$0xf0]  ;;  %v4093_v34 = vld [vmem:[#allocation2 + $0x3b0] sm:$0xf] }
  0x69   :  { %1234 = vmatpush.bf16.msra.mxu0 %v3826_v52  ;;  %v3782_v52 = vor.u32 %v5246_v41, %v3781_v40  ;;  %v3817_v40 = vld [vmem:[#allocation2 + $0x188] sm:$0xf]  ;;  %v5255_v41 = vld [vmem:[#allocation2 + $0x190] sm:$0xf0] }
  0x6a   :  { %1248 = vmatpush.bf16.msra.mxu1 %v3922_v53  ;;  %v3674_v53 = vor.u32 %v5219_v44, %v3673_v43  ;;  %v5282_v43 = vld [vmem:[#allocation2 + $0x268] sm:$0xf0]  ;;  %v4201_v44 = vld [vmem:[#allocation2 + $0x488] sm:$0xf] }
  0x6b   :  { %1275 = vmatpush.bf16.msrb.mxu2 %v4126_v48  ;;  %v5267_v48 = vld [vmem:[#allocation2 + $0x1f0] sm:$0xf0] }
  0x6c   :  { %1262 = vmatpush.bf16.msra.mxu3 %v4018_v58  ;;  %v5216_v58 = vld [vmem:[#allocation2 + $0x58] sm:$0xf0]  ;;  %v3866_v59 = vor.u32 %v5267_v48, %v3865_v47  ;;  %v4094_v48 = vor.u32 %v5324_v35, %v4093_v34  ;;  %v5303_v34 = vld [vmem:[#allocation2 + $0x310] sm:$0xf0]  ;;  %v4292_v35 = vld [vmem:[%s6408_s2 + $0xa8] sm:$0xf] }
  0x6d   :  { %1235 = vmatpush.bf16.msra.mxu0 %v3814_v6  ;;  %v3662_v3 = vor.u32 %v5216_v58, %v3661_v57  ;;  %v3649_v6 = vld [vmem:[#allocation2 + $0x38] sm:$0xf]  ;;  %v5321_v57 = vld [vmem:[#allocation2 + $0x3a0] sm:$0xf0] }
  0x6e   :  { %1249 = vmatpush.bf16.msra.mxu1 %v3910_v7  ;;  %v5213_v7 = vld [vmem:[#allocation2 + $0x40] sm:$0xf0] }
  0x6f   :  { %1276 = vmatpush.bf16.msrb.mxu2 %v4114_v1  ;;  %v3770_v1 = vor.u32 %v5243_v56, %v3769_v55  ;;  %v3650_v16 = vor.u32 %v5213_v7, %v3649_v6  ;;  %v5348_v55 = vld [vmem:[#allocation2 + $0x478] sm:$0xf0]  ;;  %v4081_v56 = vld [vmem:[#allocation2 + $0x398] sm:$0xf] }
  0x70   :  { %1263 = vmatpush.bf16.msra.mxu3 %v4006_v10  ;;  %1236 = vmatmul.bf16.vlgmr.msra.gmra.mxu0 %v5773_v54  ;;  %v3841_v10 = vld [vmem:[#allocation2 + $0x1b8] sm:$0xf]  ;;  %v4082_v0 = vor.u32 %v5321_v57, %v4081_v56 }
  0x71   :  { %1326 = vmatpush.bf16.msrb.mxu0 %v3902_v18  ;;  %1250 = vmatmul.bf16.vlgmr.msra.gmra.mxu1 %v5800_v23  ;;  %v5237_v18 = vld [vmem:[#allocation2 + $0x100] sm:$0xf0] }
  0x72   :  { %1298 = vmatpush.bf16.msrb.mxu1 %v3710_v11  ;;  %v5261_v11 = vld [vmem:[#allocation2 + $0x1c0] sm:$0xf0]  ;;  %v3746_v28 = vor.u32 %v5237_v18, %v3745_v17  ;;  %v5312_v17 = vld [vmem:[#allocation2 + $0x358] sm:$0xf0] }
  0x73   :  { %1277 = vmatpush.bf16.msrb.mxu2 %v4102_v19  ;;  %1264 = vmatmul.bf16.vlgmr.msra.gmra.mxu3 %v5825_v37  ;;  %v3637_v19 = vld [vmem:[#allocation2 + $0x20] sm:$0xf]  ;;  %v3842_v21 = vor.u32 %v5261_v11, %v3841_v10  ;;  %v5342_v10 = vld [vmem:[#allocation2 + $0x448] sm:$0xf0]  ;;  %v4057_v11 = vld [vmem:[#allocation2 + $0x368] sm:$0xf] }
  0x74   :  { %1291 = vmatpush.bf16.msrb.mxu3 %v4198_v13  ;;  %v5288_v13 = vld [vmem:[#allocation2 + $0x298] sm:$0xf0]  ;;  %v3638_v29 = vor.u32 %v5210_v20, %v3637_v19  ;;  %v4141_v20 = vld [vmem:[#allocation2 + $0x410] sm:$0xf] }
  0x75   :  { %1327 = vmatpush.bf16.msrb.mxu0 %v3890_v31  ;;  %v3950_v22 = vor.u32 %v5288_v13, %v3949_v12  ;;  %v5234_v31 = vld [vmem:[#allocation2 + $0xe8] sm:$0xf0]  ;;  %v5315_v12 = vld [vmem:[#allocation2 + $0x370] sm:$0xf0] }
  0x76   :  { %1299 = vmatpush.bf16.msrb.mxu1 %v3698_v26  ;;  %1278 = vmatmul.bf16.vlgmr.msrb.gmra.mxu2 %v5827_v42  ;;  %v3937_v26 = vld [vmem:[#allocation2 + $0x278] sm:$0xf] }
  0x77   :  { %1340 = vmatpush.bf16.msra.mxu2 %v3998_v32  ;;  %v3625_v32 = vld [vmem:[#allocation2 + $0x8] sm:$0xf] }
  0x78   :  { %1312 = vmatpush.bf16.msra.mxu3 %v3806_v25  ;;  %v5258_v25 = vld [vmem:[#allocation2 + $0x1a8] sm:$0xf0]  ;;  %v3626_v47 = vor.u32 %v5207_v33, %v3625_v32  ;;  %v4009_v33 = vld [vmem:[#allocation2 + $0x308] sm:$0xf] }
  0x79   :  { %1328 = vmatpush.bf16.msrb.mxu0 %v3878_v45  ;;  %v3830_v36 = vor.u32 %v5258_v25, %v3829_v24  ;;  %v5351_v45 = vld [vmem:[#allocation2 + $0x490] sm:$0xf0]  ;;  %v5309_v24 = vld [vmem:[#allocation2 + $0x340] sm:$0xf0]  ;;  %v5330_v32 = vld [vmem:[#allocation2 + $0x3e8] sm:$0xf0] }
  0x7a   :  { %1300 = vmatpush.bf16.msrb.mxu1 %v3686_v39  ;;  %v3925_v39 = vld [vmem:[#allocation2 + $0x260] sm:$0xf] }
  0x7b   :  { %1341 = vmatpush.bf16.msra.mxu2 %v3986_v46  ;;  %v3734_v46 = vor.u32 %v5234_v31, %v3733_v30  ;;  %v3926_v58 = vor.u32 %v5282_v43, %v3925_v39  ;;  %v4117_v31 = vld [vmem:[#allocation2 + $0x3e0] sm:$0xf]  ;;  %v5371_v39 = vld [vmem:[%s6408_s2 + $0x98] sm:$0xf0]  ;;  %v4105_v43 = vld [vmem:[#allocation2 + $0x3c8] sm:$0xf] }
  0x7c   :  { %1313 = vmatpush.bf16.msra.mxu3 %v3794_v38  ;;  %v3938_v38 = vor.u32 %v5285_v27, %v3937_v26  ;;  %v4129_v26 = vld [vmem:[#allocation2 + $0x3f8] sm:$0xf]  ;;  %v5333_v27 = vld [vmem:[#allocation2 + $0x400] sm:$0xf0] }
  0x7d   :  { %1329 = vmatpush.bf16.msrb.mxu0 %v3866_v59  ;;  %v4202_v59 = vor.u32 %v5351_v45, %v4201_v44  ;;  %v5327_v44 = vld [vmem:[#allocation2 + $0x3d0] sm:$0xf0] }
  0x7e   :  { %1301 = vmatpush.bf16.msrb.mxu1 %v3674_v53  ;;  %v3818_v53 = vor.u32 %v5255_v41, %v3817_v40  ;;  %v4118_v40 = vor.u32 %v5330_v32, %v4117_v31  ;;  %v4010_v41 = vor.u32 %v5303_v34, %v4009_v33 }
  0x7f   :  { %1342 = vmatpush.bf16.msra.mxu2 %v3974_v60  ;;  %v3913_v60 = vld [vmem:[#allocation2 + $0x248] sm:$0xf] }
  0x80   :  { %1314 = vmatpush.bf16.msra.mxu3 %v3782_v52  ;;  %v4189_v52 = vld [vmem:[#allocation2 + $0x470] sm:$0xf]  ;;  %v3914_v6 = vor.u32 %v5279_v61, %v3913_v60  ;;  %v4256_v60 = vld [vmem:[%s6408_s2 + $0x60] sm:$0xf] }
  0x81   :  { %1330 = vmatpush.bf16.msrb.mxu0 %v3854_v8  ;;  %v4190_v63 = vor.u32 %v5348_v55, %v4189_v52  ;;  %v4070_v8 = vor.u32 %v5318_v5, %v4069_v4  ;;  %v4282_v52 = vld [vmem:[%s6408_s2 + $0x9c] sm:$0xf0]  ;;  %v5368_v55 = vld [vmem:[%s6408_s2 + $0x80] sm:$0xf0]  ;;  %v5361_v5 = vld [vmem:[%s6408_s2 + $0x4c] sm:$0xf] }
  0x82   :  { %1302 = vmatpush.bf16.msrb.mxu1 %v3662_v3  ;;  %v5345_v3 = vld [vmem:[#allocation2 + $0x460] sm:$0xf0]  ;;  %v4285_v57 = vor.u32 %v5370_v51, %v4282_v52  ;;  %v4376_v52 = vld [vmem:[%s6408_s2 + $0x150] sm:$0xf] }
  0x83   :  { %1343 = vmatpush.bf16.msra.mxu2 %v3962_v9  ;;  %4204 = vmatmul.msk.bf16.vlgmr.msrb.gmra.mxu3 %vm1098_vm0, %v5809_v50  ;;  %v4165_v9 = vld [vmem:[#allocation2 + $0x440] sm:$0xf] }
  0x84   :  { %1315 = vmatpush.bf16.msra.mxu3 %v3770_v1  ;;  %v4177_v1 = vld [vmem:[#allocation2 + $0x458] sm:$0xf]  ;;  %v4166_v13 = vor.u32 %v5342_v10, %v4165_v9 }
  0x85   :  { %1331 = vmatpush.bf16.msrb.mxu0 %v3842_v21  ;;  %v4178_v7 = vor.u32 %v5345_v3, %v4177_v1  ;;  %v5336_v21 = vld [vmem:[#allocation2 + $0x418] sm:$0xf0]  ;;  %v5362_v1 = vld [vmem:[%s6408_s2 + $0x50] sm:$0xf0] }
  0x86   :  { %1303 = vmatpush.bf16.msrb.mxu1 %v3650_v16  ;;  %v4153_v16 = vld [vmem:[#allocation2 + $0x428] sm:$0xf] }
  0x87   :  { %1344 = vmatpush.bf16.msra.mxu2 %v3950_v22  ;;  %v4033_v22 = vld [vmem:[#allocation2 + $0x338] sm:$0xf] }
  0x88   :  { %1316 = vmatpush.bf16.msra.mxu3 %v3758_v15  ;;  %v4058_v15 = vor.u32 %v5315_v12, %v4057_v11  ;;  %v4034_v25 = vor.u32 %v5309_v24, %v4033_v22  ;;  %v5358_v11 = vld [vmem:[%s6408_s2 + $0x34] sm:$0xf]  ;;  %v4234_v12 = vld [vmem:[%s6408_s2 + $0x3c] sm:$0xf0]  ;;  %v5353_v22 = vld [vmem:[%s6408_s2 + $0x8] sm:$0xf0] }
  0x89   :  { %1332 = vmatpush.bf16.msrb.mxu0 %v3830_v36  ;;  %v5374_v36 = vld [vmem:[%s6408_s2 + $0xb0] sm:$0xf0] }
  0x8a   :  { %1304 = vmatpush.bf16.msrb.mxu1 %v3638_v29  ;;  %v5306_v29 = vld [vmem:[#allocation2 + $0x328] sm:$0xf0] }
  0x8b   :  { %1345 = vmatpush.bf16.msra.mxu2 %v3938_v38  ;;  %v4293_v38 = vor.u32 %v5374_v36, %v4292_v35 }
  0x8c   :  { %1317 = vmatpush.bf16.msra.mxu3 %v3746_v28  ;;  %v4021_v28 = vld [vmem:[#allocation2 + $0x320] sm:$0xf] }
  0x8d   :  { %1333 = vmatpush.bf16.msrb.mxu0 %v3818_v53  ;;  %v4022_v30 = vor.u32 %v5306_v29, %v4021_v28  ;;  %v4268_v53 = vld [vmem:[%s6408_s2 + $0x78] sm:$0xf] }
  0x8e   :  { %1305 = vmatpush.bf16.msrb.mxu1 %v3626_v47  ;;  %v4294_v47 = vld [vmem:[%s6408_s2 + $0xb4] sm:$0xf0]  ;;  %v4269_v56 = vor.u32 %v5368_v55, %v4268_v53  ;;  %v5395_v53 = vld [vmem:[%s6408_s2 + $0x158] sm:$0xf0]  ;;  %v5394_v55 = vld [vmem:[%s6408_s2 + $0x154] sm:$0xf] }
  0x8f   :  { %1346 = vmatpush.bf16.msra.mxu2 %v3926_v58  ;;  %v5367_v58 = vld [vmem:[%s6408_s2 + $0x7c] sm:$0xf] }
  0x90   :  { %1318 = vmatpush.bf16.msra.mxu3 %v3734_v46  ;;  %1334 = vmatmul.bf16.vlgmr.msrb.gmra.mxu0 %v5773_v54  ;;  %v4045_v54 = vld [vmem:[#allocation2 + $0x350] sm:$0xf]  ;;  %v5373_v46 = vld [vmem:[%s6408_s2 + $0xac] sm:$0xf] }
  0x91   :  { %1389 = vmatpush.bf16.msra.mxu0 %v4202_v59  ;;  %1306 = vmatmul.bf16.vlgmr.msrb.gmra.mxu1 %v5781_v2  ;;  %v5339_v2 = vld [vmem:[#allocation2 + $0x430] sm:$0xf0]  ;;  %v4046_v19 = vor.u32 %v5312_v17, %v4045_v54  ;;  %v4297_v49 = vor.u32 %v5373_v46, %v4294_v47  ;;  %v4270_v59 = vld [vmem:[%s6408_s2 + $0x84] sm:$0xf0]  ;;  %v4237_v17 = vor.u32 %v5358_v11, %v4234_v12  ;;  %v4396_v46 = vld [vmem:[%s6408_s2 + $0x170] sm:$0xf] }
  0x92   :  { %1354 = vmatpush.bf16.msra.mxu1 %v4094_v48  ;;  %v4154_v18 = vor.u32 %v5339_v2, %v4153_v16  ;;  %v4106_v48 = vor.u32 %v5327_v44, %v4105_v43  ;;  %v5399_v47 = vld [vmem:[%s6408_s2 + $0x178] sm:$0xf0] }
  0x93   :  { %1347 = vmatpush.bf16.msra.mxu2 %v3914_v6  ;;  %v4246_v6 = vld [vmem:[%s6408_s2 + $0x54] sm:$0xf0]  ;;  %v4397_v51 = vor.u32 %v5399_v47, %v4396_v46  ;;  %v5380_v46 = vld [vmem:[%s6408_s2 + $0xe0] sm:$0xf0]  ;;  %v5379_v47 = vld [vmem:[%s6408_s2 + $0xdc] sm:$0xf] }
  0x94   :  { %1319 = vmatpush.bf16.msra.mxu3 %v3722_v62  ;;  %v4273_v62 = vor.u32 %v5367_v58, %v4270_v59  ;;  %v4249_v10 = vor.u32 %v5361_v5, %v4246_v6  ;;  %v4377_v58 = vor.u32 %v5395_v53, %v4376_v52  ;;  %v4378_v59 = vld [vmem:[%s6408_s2 + $0x15c] sm:$0xf0]  ;;  %v5381_v52 = vld [vmem:[%s6408_s2 + $0xe8] sm:$0xf0] }
  0x96   :  { %1355 = vmatpush.bf16.msra.mxu1 %v4082_v0  ;;  %1348 = vmatmul.bf16.vlgmr.msra.gmra.mxu2 %v5800_v23  ;;  %v4130_v23 = vor.u32 %v5333_v27, %v4129_v26  ;;  %v4244_v0 = vld [vmem:[%s6408_s2 + $0x48] sm:$0xf]  ;;  %v4210_v26 = vld [vmem:[%s6408_s2 + $0xc] sm:$0xf0] }
  0x97   :  { %1320 = vmatmul.bf16.vlgmr.msra.gmra.mxu3 %v5791_v14  ;;  %v4142_v14 = vor.u32 %v5336_v21, %v4141_v20  ;;  %1885 = vmatpush.bf16.msrb.mxu2 %v4293_v38  ;;  %v4245_v3 = vor.u32 %v5362_v1, %v4244_v0  ;;  %v4222_v20 = vld [vmem:[%s6408_s2 + $0x24] sm:$0xf0]  ;;  %v4208_v21 = vld [vmem:[%s6408_s2] sm:$0xf]  ;;  %v4364_v1 = vld [vmem:[%s6408_s2 + $0x138] sm:$0xf] }
  0x98   :  { %1368 = vmatpush.bf16.msrb.mxu3 %v4190_v63  ;;  %v5364_v63 = vld [vmem:[%s6408_s2 + $0x64] sm:$0xf]  ;;  %v4209_v24 = vor.u32 %v5353_v22, %v4208_v21  ;;  %v4360_v21 = vld [vmem:[%s6408_s2 + $0x128] sm:$0xf] }
  0x9a   :  { %1356 = vmatpush.bf16.msra.mxu1 %v4070_v8  ;;  %v5359_v8 = vld [vmem:[%s6408_s2 + $0x38] sm:$0xf0] }
  0x9c   :  { %1369 = vmatpush.bf16.msrb.mxu3 %v4178_v7  ;;  %v4232_v7 = vld [vmem:[%s6408_s2 + $0x30] sm:$0xf] }
  0x9d   :  { %v4233_v9 = vor.u32 %v5359_v8, %v4232_v7  ;;  %v4366_v8 = vld [vmem:[%s6408_s2 + $0x144] sm:$0xf0] }
  0x9e   :  { %1357 = vmatpush.bf16.msra.mxu1 %v4058_v15  ;;  %v5356_v15 = vld [vmem:[%s6408_s2 + $0x20] sm:$0xf0] }
  0xa0   :  { %1370 = vmatpush.bf16.msrb.mxu3 %v4166_v13  ;;  %4205 = vmatmul.msk.bf16.vlgmr.msra.gmra.mxu0 %vm1098_vm0, %v5809_v50  ;;  %v4280_v50 = vld [vmem:[%s6408_s2 + $0x90] sm:$0xf]  ;;  %v4220_v13 = vld [vmem:[%s6408_s2 + $0x18] sm:$0xf] }
  0xa1   :  { %v4281_v45 = vor.u32 %v5371_v39, %v4280_v50  ;;  %v4221_v2 = vor.u32 %v5356_v15, %v4220_v13  ;;  %v4388_v50 = vld [vmem:[%s6408_s2 + $0x168] sm:$0xf]  ;;  %v5398_v39 = vld [vmem:[%s6408_s2 + $0x170] sm:$0xf0] }
  0xa2   :  { %1358 = vmatpush.bf16.msra.mxu1 %v4046_v19  ;;  %v5355_v19 = vld [vmem:[%s6408_s2 + $0x1c] sm:$0xf]  ;;  %v4389_v44 = vor.u32 %v5398_v39, %v4388_v50  ;;  %v4330_v39 = vld [vmem:[%s6408_s2 + $0xfc] sm:$0xf0] }
  0xa3   :  { %1886 = vmatpush.bf16.msrb.mxu2 %v4281_v45  ;;  %v4390_v45 = vld [vmem:[%s6408_s2 + $0x174] sm:$0xf0] }
  0xa4   :  { %1371 = vmatpush.bf16.msrb.mxu3 %v4154_v18  ;;  %1899 = vmatpush.bf16.msrb.mxu0 %v4389_v44 }
  0xa6   :  { %1359 = vmatpush.bf16.msra.mxu1 %v4034_v25  ;;  %v5352_v25 = vld [vmem:[%s6408_s2 + $0x4] sm:$0xf] }
  0xa7   :  { %1887 = vmatpush.bf16.msrb.mxu2 %v4269_v56  ;;  %v4213_v27 = vor.u32 %v5352_v25, %v4210_v26  ;;  %v4340_v26 = vld [vmem:[%s6408_s2 + $0x108] sm:$0xf] }
  0xa8   :  { %1372 = vmatpush.bf16.msrb.mxu3 %v4142_v14  ;;  %v4225_v14 = vor.u32 %v5355_v19, %v4222_v20  ;;  %1900 = vmatpush.bf16.msrb.mxu0 %v4377_v58  ;;  %v4354_v20 = vld [vmem:[%s6408_s2 + $0x12c] sm:$0xf0]  ;;  %v4304_v58 = vld [vmem:[%s6408_s2 + $0xc0] sm:$0xf] }
  0xaa   :  { %1360 = vmatpush.bf16.msra.mxu1 %v4022_v30 }
  0xac   :  { %1373 = vmatpush.bf16.msrb.mxu3 %v4130_v23 }
  0xad   :  { %v1111_v16 = vpop.f32.mrf.mxu0 }
  0xae   :  { %1361 = vmatpush.bf16.msra.mxu1 %v4010_v41  ;;  %v1125_v54 = vpop.f32.mrf.mxu1 }
  0xaf   :  { %v1126_v29 = vadd.f32 %v1125_v54, %v1111_v16  ;;  %v4352_v16 = vld [vmem:[%s6408_s2 + $0x120] sm:$0xf]  ;;  %v5388_v54 = vld [vmem:[%s6408_s2 + $0x124] sm:$0xf] }
  0xb0   :  { %1374 = vmatpush.bf16.msrb.mxu3 %v4118_v40  ;;  %v5397_v40 = vld [vmem:[%s6408_s2 + $0x16c] sm:$0xf]  ;;  %v4357_v22 = vor.u32 %v5388_v54, %v4354_v20  ;;  %v4448_v20 = vld [vmem:[%s6408_s2 + $0x1e0] sm:$0xf] }
  0xb1   :  { %1362 = vmatmul.bf16.vlgmr.msra.gmra.mxu1 %v5825_v37  ;;  %v5365_v37 = vld [vmem:[%s6408_s2 + $0x68] sm:$0xf0] }
  0xb2   :  { %v4257_v61 = vor.u32 %v5365_v37, %v4256_v60  ;;  %v4384_v60 = vld [vmem:[%s6408_s2 + $0x158] sm:$0xf] }
  0xb4   :  { %1375 = vmatpush.bf16.msrb.mxu3 %v4106_v48  ;;  %1888 = vmatpush.bf16.msrb.mxu2 %v4257_v61  ;;  %v4381_v61 = vor.u32 %v5394_v55, %v4378_v59  ;;  %v5377_v59 = vld [vmem:[%s6408_s2 + $0xc8] sm:$0xf0] }
  0xb5   :  { %v1139_v18 = vpop.f32.mrf.mxu2  ;;  %v1113_v28 = vpop.f32.mrf.mxu0 }
  0xb6   :  { %v1127_v23 = vpop.f32.mrf.mxu1  ;;  %v1153_v31 = vpop.f32.mrf.mxu3  ;;  %v1140_v32 = vadd.f32 %v1139_v18, %v1126_v29 }
  0xb7   :  { %1376 = vmatmul.bf16.vlgmr.msrb.gmra.mxu3 %v5827_v42  ;;  %v4258_v42 = vld [vmem:[%s6408_s2 + $0x6c] sm:$0xf0]  ;;  %v1128_v33 = vadd.f32 %v1127_v23, %v1113_v28  ;;  %v5385_v28 = vld [vmem:[%s6408_s2 + $0x10c] sm:$0xf] }
  0xb8   :  { %1927 = vmatpush.bf16.msra.mxu3 %v4297_v49  ;;  %v4261_v4 = vor.u32 %v5364_v63, %v4258_v42  ;;  %1889 = vmatpush.bf16.msrb.mxu2 %v4245_v3  ;;  %v1154_v34 = vadd.f32 %v1153_v31, %v1140_v32  ;;  %v4393_v49 = vor.u32 %v5397_v40, %v4390_v45  ;;  %v5392_v3 = vld [vmem:[%s6408_s2 + $0x140] sm:$0xf0]  ;;  %v4348_v31 = vld [vmem:[%s6408_s2 + $0x110] sm:$0xf]  ;;  %v5387_v32 = vld [vmem:[%s6408_s2 + $0x118] sm:$0xf0] }
  0xb9   :  { %v4365_v7 = vor.u32 %v5392_v3, %v4364_v1  ;;  %v4336_v40 = vld [vmem:[%s6408_s2 + $0xf8] sm:$0xf] }
  0xba   :  { %v4316_v45 = vld [vmem:[%s6408_s2 + $0xd8] sm:$0xf] }
  0xbb   :  { %1901 = vmatpush.bf16.msrb.mxu0 %v4365_v7 }
  0xbc   :  { %1928 = vmatpush.bf16.msra.mxu3 %v4285_v57  ;;  %1890 = vmatpush.bf16.msrb.mxu2 %v4233_v9  ;;  %v4372_v9 = vld [vmem:[%s6408_s2 + $0x140] sm:$0xf] }
  0xbd   :  { %v1141_v30 = vpop.f32.mrf.mxu2 }
  0xbe   :  { %v1142_v43 = vadd.f32 %v1141_v30, %v1128_v33  ;;  %v1155_v48 = vpop.f32.mrf.mxu3  ;;  %v4342_v30 = vld [vmem:[%s6408_s2 + $0x114] sm:$0xf0] }
  0xbf   :  { %v4345_v33 = vor.u32 %v5385_v28, %v4342_v30  ;;  %v4436_v30 = vld [vmem:[%s6408_s2 + $0x1c8] sm:$0xf] }
  0xc0   :  { %1929 = vmatpush.bf16.msra.mxu3 %v4273_v62  ;;  %1891 = vmatpush.bf16.msrb.mxu2 %v4221_v2  ;;  %v1156_v57 = vadd.f32 %v1155_v48, %v1142_v43  ;;  %v5396_v62 = vld [vmem:[%s6408_s2 + $0x160] sm:$0xf0]  ;;  %v5389_v2 = vld [vmem:[%s6408_s2 + $0x128] sm:$0xf0]  ;;  %v4317_v48 = vor.u32 %v5380_v46, %v4316_v45 }
  0xc1   :  { %v4385_v0 = vor.u32 %v5396_v62, %v4384_v60  ;;  %v4353_v19 = vor.u32 %v5389_v2, %v4352_v16  ;;  %v5376_v60 = vld [vmem:[%s6408_s2 + $0xc4] sm:$0xf]  ;;  %v4312_v62 = vld [vmem:[%s6408_s2 + $0xc8] sm:$0xf] }
  0xc3   :  { %1902 = vmatpush.bf16.msrb.mxu0 %v4353_v19 }
  0xc4   :  { %1930 = vmatpush.bf16.msra.mxu3 %v4261_v4  ;;  %1892 = vmatpush.bf16.msrb.mxu2 %v4209_v24  ;;  %v5391_v4 = vld [vmem:[%s6408_s2 + $0x13c] sm:$0xf]  ;;  %v5390_v24 = vld [vmem:[%s6408_s2 + $0x130] sm:$0xf0] }
  0xc5   :  { %v1195_v38 = vpop.f32.mrf.mxu2  ;;  %v4369_v12 = vor.u32 %v5391_v4, %v4366_v8  ;;  %v4361_v25 = vor.u32 %v5390_v24, %v4360_v21  ;;  %v4484_v4 = vld [vmem:[%s6408_s2 + $0x228] sm:$0xf]  ;;  %v4472_v8 = vld [vmem:[%s6408_s2 + $0x210] sm:$0xf]  ;;  %v5413_v21 = vld [vmem:[%s6408_s2 + $0x1e8] sm:$0xf0] }
  0xc8   :  { %1931 = vmatpush.bf16.msra.mxu3 %v4249_v10  ;;  %1941 = vmatpush.bf16.msra.mxu2 %v4393_v49  ;;  %v5393_v10 = vld [vmem:[%s6408_s2 + $0x148] sm:$0xf0]  ;;  %v4318_v49 = vld [vmem:[%s6408_s2 + $0xe4] sm:$0xf0] }
  0xc9   :  { %v4373_v13 = vor.u32 %v5393_v10, %v4372_v9  ;;  %v4321_v53 = vor.u32 %v5379_v47, %v4318_v49  ;;  %v5419_v9 = vld [vmem:[%s6408_s2 + $0x218] sm:$0xf0]  ;;  %v4424_v47 = vld [vmem:[%s6408_s2 + $0x1b0] sm:$0xf] }
  0xca   :  { %v5415_v49 = vld [vmem:[%s6408_s2 + $0x1fc] sm:$0xf] }
  0xcc   :  { %1932 = vmatpush.bf16.msra.mxu3 %v4237_v17  ;;  %1942 = vmatpush.bf16.msra.mxu2 %v4381_v61  ;;  %v4306_v61 = vld [vmem:[%s6408_s2 + $0xcc] sm:$0xf0] }
  0xcd   :  { %v1167_v35 = vpop.f32.mrf.mxu0  ;;  %v1197_v11 = vpop.f32.mrf.mxu2 }
  0xce   :  { %v1181_v36 = vpop.f32.mrf.mxu1  ;;  %v1168_v41 = vadd.f32 %v1167_v35, %v1154_v34  ;;  %v4349_v34 = vor.u32 %v5387_v32, %v4348_v31  ;;  %v4328_v35 = vld [vmem:[%s6408_s2 + $0xf0] sm:$0xf]  ;;  %v5410_v31 = vld [vmem:[%s6408_s2 + $0x1d0] sm:$0xf0] }
  0xd0   :  { %1933 = vmatpush.bf16.msra.mxu3 %v4225_v14  ;;  %v1182_v56 = vadd.f32 %v1181_v36, %v1168_v41  ;;  %1943 = vmatpush.bf16.msra.mxu2 %v4369_v12  ;;  %v5383_v36 = vld [vmem:[%s6408_s2 + $0xf8] sm:$0xf0]  ;;  %v5384_v41 = vld [vmem:[%s6408_s2 + $0x100] sm:$0xf0]  ;;  %v4460_v12 = vld [vmem:[%s6408_s2 + $0x1f8] sm:$0xf] }
  0xd1   :  { %v4329_v50 = vor.u32 %v5383_v36, %v4328_v35  ;;  %v4337_v44 = vor.u32 %v5384_v41, %v4336_v40  ;;  %v5418_v35 = vld [vmem:[%s6408_s2 + $0x214] sm:$0xf]  ;;  %v4474_v36 = vld [vmem:[%s6408_s2 + $0x21c] sm:$0xf0]  ;;  %v5420_v40 = vld [vmem:[%s6408_s2 + $0x220] sm:$0xf0] }
  0xd2   :  { %v1196_v5 = vadd.f32 %v1195_v38, %v1182_v56  ;;  %v5382_v38 = vld [vmem:[%s6408_s2 + $0xf4] sm:$0xf] }
  0xd3   :  { %v4333_v43 = vor.u32 %v5382_v38, %v4330_v39  ;;  %v4480_v38 = vld [vmem:[%s6408_s2 + $0x218] sm:$0xf]  ;;  %v4477_v39 = vor.u32 %v5418_v35, %v4474_v36  ;;  %v5369_v35 = vld [vmem:[%s6408_s2 + $0x88] sm:$0xf0]  ;;  %v4420_v36 = vld [vmem:[%s6408_s2 + $0x1a0] sm:$0xf] }
  0xd4   :  { %1934 = vmatpush.bf16.msra.mxu3 %v4213_v27  ;;  %v1396_v17 = vmax.f32 %v1196_v5, 0.0  ;;  %1944 = vmatpush.bf16.msra.mxu2 %v4357_v22  ;;  %v5386_v27 = vld [vmem:[%s6408_s2 + $0x110] sm:$0xf0]  ;;  %v4449_v22 = vor.u32 %v5413_v21, %v4448_v20 }
  0xd5   :  { %v1169_v37 = vpop.f32.mrf.mxu0  ;;  %v4341_v23 = vor.u32 %v5386_v27, %v4340_v26  ;;  %v5422_v5 = vld [vmem:[%s6408_s2 + $0x230] sm:$0xf0]  ;;  %v4486_v26 = vld [vmem:[%s6408_s2 + $0x234] sm:$0xf0]  ;;  %v4492_v27 = vld [vmem:[%s6408_s2 + $0x230] sm:$0xf] }
  0xd6   :  { %v1170_v63 = vadd.f32 %v1169_v37, %v1156_v57  ;;  %v1183_v42 = vpop.f32.mrf.mxu1  ;;  %v6026_v29 = vpop.f32.mrf.mxu3  ;;  %v4305_v37 = vor.u32 %v5377_v59, %v4304_v58  ;;  %v4412_v59 = vld [vmem:[%s6408_s2 + $0x198] sm:$0xf]  ;;  %v5406_v21 = vld [vmem:[%s6408_s2 + $0x1b4] sm:$0xf] }
  0xd7   :  { %1903 = vmatpush.bf16.msrb.mxu0 %v4341_v23  ;;  %v5423_v23 = vld [vmem:[%s6408_s2 + $0x238] sm:$0xf0] }
  0xd8   :  { %1983 = vmatpush.bf16.msrb.mxu3 %v4397_v51  ;;  %v1184_v6 = vadd.f32 %v1183_v42, %v1170_v63  ;;  %1945 = vmatpush.bf16.msra.mxu2 %v4345_v33  ;;  %v4324_v51 = vld [vmem:[%s6408_s2 + $0xe0] sm:$0xf]  ;;  %v5378_v63 = vld [vmem:[%s6408_s2 + $0xd0] sm:$0xf0]  ;;  %v4309_v42 = vor.u32 %v5376_v60, %v4306_v61  ;;  %v4493_v33 = vor.u32 %v5423_v23, %v4492_v27  ;;  %v5404_v60 = vld [vmem:[%s6408_s2 + $0x1a0] sm:$0xf0] }
  0xd9   :  { %v4325_v55 = vor.u32 %v5381_v52, %v4324_v51  ;;  %v1223_v56 = vpop.f32.mrf.mxu2  ;;  %v4432_v27 = vld [vmem:[%s6408_s2 + $0x1b8] sm:$0xf] }
  0xda   :  { %v1198_v15 = vadd.f32 %v1197_v11, %v1184_v6  ;;  %v4485_v6 = vor.u32 %v5422_v5, %v4484_v4  ;;  %v4473_v11 = vor.u32 %v5419_v9, %v4472_v8  ;;  %v1224_v2 = vadd.f32 %v1223_v56, %v6026_v29  ;;  %v5417_v56 = vld [vmem:[%s6408_s2 + $0x208] sm:$0xf0]  ;;  %v4400_v9 = vld [vmem:[%s6408_s2 + $0x180] sm:$0xf] }
  0xdb   :  { %1904 = vmatpush.bf16.msrb.mxu0 %v4329_v50 }
  0xdc   :  { %1984 = vmatpush.bf16.msrb.mxu3 %v4385_v0  ;;  %v1399_v18 = vmax.f32 %v1198_v15, 0.0  ;;  %1946 = vmatpush.bf16.msra.mxu2 %v4333_v43  ;;  %v4313_v0 = vor.u32 %v5378_v63, %v4312_v62  ;;  %v4413_v63 = vor.u32 %v5404_v60, %v4412_v59  ;;  %v5360_v59 = vld [vmem:[%s6408_s2 + $0x40] sm:$0xf0] }
  0xdd   :  { %1913 = vmatpush.bf16.msrb.mxu1 %v4485_v6 }
  0xde   :  { %v6015_v14 = vpack.c.bf16 %v1399_v18, %v1396_v17  ;;  %v1211_v57 = vpop.f32.mrf.mxu3 }
  0xdf   :  { %1905 = vmatpush.bf16.msrb.mxu0 %v4317_v48  ;;  %v5407_v48 = vld [vmem:[%s6408_s2 + $0x1b8] sm:$0xf0] }
  0xe0   :  { %1985 = vmatpush.bf16.msrb.mxu3 %v4373_v13  ;;  %1893 = vmatmul.bf16.vlgmr.msrb.gmra.mxu2 %v6015_v14  ;;  %v5416_v13 = vld [vmem:[%s6408_s2 + $0x200] sm:$0xf0]  ;;  %v4425_v52 = vor.u32 %v5407_v48, %v4424_v47  ;;  %v4408_v47 = vld [vmem:[%s6408_s2 + $0x188] sm:$0xf]  ;;  %v5402_v48 = vld [vmem:[%s6408_s2 + $0x190] sm:$0xf0] }
  0xe1   :  { %1935 = vmatmul.bf16.vlgmr.msra.gmra.mxu3 %v6015_v14  ;;  %1947 = vmatpush.bf16.msra.mxu2 %v4321_v53  ;;  %v1225_v7 = vpop.f32.mrf.mxu2  ;;  %v4461_v15 = vor.u32 %v5416_v13, %v4460_v12  ;;  %v4462_v53 = vld [vmem:[%s6408_s2 + $0x204] sm:$0xf0]  ;;  %v5409_v13 = vld [vmem:[%s6408_s2 + $0x1cc] sm:$0xf] }
  0xe2   :  { %1914 = vmatpush.bf16.msrb.mxu1 %v4473_v11  ;;  %v1226_v18 = vadd.f32 %v1225_v7, %v1211_v57  ;;  %v4465_v57 = vor.u32 %v5415_v49, %v4462_v53 }
  0xe3   :  { %1906 = vmatpush.bf16.msrb.mxu0 %v4305_v37  ;;  %v5412_v37 = vld [vmem:[%s6408_s2 + $0x1e4] sm:$0xf] }
  0xe4   :  { %1986 = vmatpush.bf16.msrb.mxu3 %v4361_v25  ;;  %v5421_v25 = vld [vmem:[%s6408_s2 + $0x22c] sm:$0xf] }
  0xe5   :  { %1948 = vmatpush.bf16.msra.mxu2 %v4309_v42  ;;  %v4489_v29 = vor.u32 %v5421_v25, %v4486_v26  ;;  %v4450_v42 = vld [vmem:[%s6408_s2 + $0x1ec] sm:$0xf0]  ;;  %v5372_v26 = vld [vmem:[%s6408_s2 + $0xa0] sm:$0xf0] }
  0xe6   :  { %1915 = vmatpush.bf16.msrb.mxu1 %v4461_v15  ;;  %v4453_v4 = vor.u32 %v5412_v37, %v4450_v42  ;;  %v4438_v15 = vld [vmem:[%s6408_s2 + $0x1d4] sm:$0xf0]  ;;  %v4228_v37 = vld [vmem:[%s6408_s2 + $0x20] sm:$0xf] }
  0xe7   :  { %1955 = vmatpush.bf16.msra.mxu0 %v4489_v29 }
  0xe8   :  { %1987 = vmatpush.bf16.msrb.mxu3 %v4349_v34  ;;  %v4437_v34 = vor.u32 %v5410_v31, %v4436_v30  ;;  %v5403_v31 = vld [vmem:[%s6408_s2 + $0x19c] sm:$0xf] }
  0xe9   :  { %1997 = vmatpush.bf16.msrb.mxu2 %v4493_v33  ;;  %v4276_v33 = vld [vmem:[%s6408_s2 + $0x80] sm:$0xf] }
  0xea   :  { %1916 = vmatpush.bf16.msrb.mxu1 %v4449_v22  ;;  %v4426_v22 = vld [vmem:[%s6408_s2 + $0x1bc] sm:$0xf0] }
  0xeb   :  { %1956 = vmatpush.bf16.msra.mxu0 %v4477_v39  ;;  %v4429_v25 = vor.u32 %v5406_v21, %v4426_v22 }
  0xec   :  { %1988 = vmatpush.bf16.msrb.mxu3 %v4337_v44  ;;  %v4481_v44 = vor.u32 %v5420_v40, %v4480_v38  ;;  %v5405_v38 = vld [vmem:[%s6408_s2 + $0x1a8] sm:$0xf0]  ;;  %v5400_v40 = vld [vmem:[%s6408_s2 + $0x184] sm:$0xf] }
  0xed   :  { %v1237_v1 = vpop.f32.mrf.mxu0  ;;  %v4421_v39 = vor.u32 %v5405_v38, %v4420_v36  ;;  %v5437_v36 = vld [vmem:[#allocation5 + $0x68] sm:$0xf0] }
  0xee   :  { %v1251_v10 = vpop.f32.mrf.mxu1  ;;  %v1238_v19 = vadd.f32 %v1237_v1, %v1224_v2  ;;  %1917 = vmatpush.bf16.msrb.mxu1 %v4437_v34  ;;  %1998 = vmatpush.bf16.msrb.mxu2 %v4481_v44  ;;  %v5414_v1 = vld [vmem:[%s6408_s2 + $0x1f0] sm:$0xf0]  ;;  %v4441_v2 = vor.u32 %v5409_v13, %v4438_v15  ;;  %v5445_v38 = vld [vmem:[#allocation5 + $0xac] sm:$0xf] }
  0xef   :  { %1957 = vmatpush.bf16.msra.mxu0 %v4465_v57 }
  0xf0   :  { %1989 = vmatpush.bf16.msrb.mxu3 %v4325_v55  ;;  %v1252_v32 = vadd.f32 %v1251_v10, %v1238_v19  ;;  %v4468_v55 = vld [vmem:[%s6408_s2 + $0x200] sm:$0xf]  ;;  %v5401_v10 = vld [vmem:[%s6408_s2 + $0x188] sm:$0xf0] }
  0xf1   :  { %v4469_v58 = vor.u32 %v5417_v56, %v4468_v55  ;;  %v4401_v12 = vor.u32 %v5401_v10, %v4400_v9  ;;  %v4252_v55 = vld [vmem:[%s6408_s2 + $0x50] sm:$0xf]  ;;  %v5363_v56 = vld [vmem:[%s6408_s2 + $0x58] sm:$0xf0] }
  0xf2   :  { %1918 = vmatpush.bf16.msrb.mxu1 %v4425_v52  ;;  %v4409_v52 = vor.u32 %v5402_v48, %v4408_v47  ;;  %v4253_v57 = vor.u32 %v5363_v56, %v4252_v55  ;;  %v4570_v48 = vld [vmem:[#allocation5 + $0x9c] sm:$0xf0]  ;;  %v4520_v55 = vld [vmem:[#allocation5 + $0x30] sm:$0xf]  ;;  %v5431_v56 = vld [vmem:[#allocation5 + $0x38] sm:$0xf0] }
  0xf3   :  { %1999 = vmatpush.bf16.msrb.mxu2 %v4469_v58  ;;  %1958 = vmatpush.bf16.msra.mxu0 %v4453_v4  ;;  %v4240_v58 = vld [vmem:[%s6408_s2 + $0x38] sm:$0xf]  ;;  %v5354_v4 = vld [vmem:[%s6408_s2 + $0x10] sm:$0xf0] }
  0xf4   :  { %1990 = vmatpush.bf16.msrb.mxu3 %v4313_v0  ;;  %v4456_v0 = vld [vmem:[%s6408_s2 + $0x1e8] sm:$0xf]  ;;  %v4241_v60 = vor.u32 %v5360_v59, %v4240_v58  ;;  %v4558_v58 = vld [vmem:[#allocation5 + $0x84] sm:$0xf0]  ;;  %v4652_v59 = vld [vmem:[#allocation5 + $0x138] sm:$0xf] }
  0xf5   :  { %v1239_v54 = vpop.f32.mrf.mxu0  ;;  %v4457_v6 = vor.u32 %v5414_v1, %v4456_v0 }
  0xf6   :  { %v1265_v3 = vpop.f32.mrf.mxu3  ;;  %v1240_v24 = vadd.f32 %v1239_v54, %v1226_v18  ;;  %v1253_v28 = vpop.f32.mrf.mxu1  ;;  %1919 = vmatpush.bf16.msrb.mxu1 %v4413_v63  ;;  %v5375_v54 = vld [vmem:[%s6408_s2 + $0xb8] sm:$0xf0] }
  0xf7   :  { %v1266_v41 = vadd.f32 %v1265_v3, %v1252_v32  ;;  %2000 = vmatpush.bf16.msrb.mxu2 %v4457_v6  ;;  %v5411_v18 = vld [vmem:[%s6408_s2 + $0x1d8] sm:$0xf0]  ;;  %1959 = vmatpush.bf16.msra.mxu0 %v4441_v2  ;;  %v4414_v32 = vld [vmem:[%s6408_s2 + $0x1a4] sm:$0xf0] }
  0xf8   :  { %v1254_v43 = vadd.f32 %v1253_v28, %v1240_v24  ;;  %v4288_v24 = vld [vmem:[%s6408_s2 + $0x98] sm:$0xf]  ;;  %v5408_v28 = vld [vmem:[%s6408_s2 + $0x1c0] sm:$0xf0]  ;;  %v4417_v34 = vor.u32 %v5403_v31, %v4414_v32  ;;  %v4556_v32 = vld [vmem:[#allocation5 + $0x78] sm:$0xf] }
  0xf9   :  { %v1279_v17 = vpop.f32.mrf.mxu2  ;;  %v4289_v23 = vor.u32 %v5372_v26, %v4288_v24  ;;  %v4433_v30 = vor.u32 %v5408_v28, %v4432_v27  ;;  %v4580_v27 = vld [vmem:[#allocation5 + $0xa8] sm:$0xf]  ;;  %v5446_v28 = vld [vmem:[#allocation5 + $0xb0] sm:$0xf0] }
  0xfa   :  { %v1280_v51 = vadd.f32 %v1279_v17, %v1266_v41  ;;  %v4444_v17 = vld [vmem:[%s6408_s2 + $0x1d0] sm:$0xf]  ;;  %1920 = vmatpush.bf16.msrb.mxu1 %v4401_v12 }
  0xfb   :  { %v4445_v20 = vor.u32 %v5411_v18, %v4444_v17  ;;  %1960 = vmatpush.bf16.msra.mxu0 %v4429_v25  ;;  %v4402_v41 = vld [vmem:[%s6408_s2 + $0x18c] sm:$0xf0] }
  0xfd   :  { %2001 = vmatpush.bf16.msrb.mxu2 %v4445_v20 }
  0xfe   :  { %v1267_v16 = vpop.f32.mrf.mxu3 }
  0xff   :  { %v1268_v45 = vadd.f32 %v1267_v16, %v1254_v43  ;;  %v4300_v16 = vld [vmem:[%s6408_s2 + $0xb0] sm:$0xf]  ;;  %1961 = vmatpush.bf16.msra.mxu0 %v4417_v34  ;;  %v4264_v43 = vld [vmem:[%s6408_s2 + $0x68] sm:$0xf] }
 0x100   :  { %v4301_v19 = vor.u32 %v5375_v54, %v4300_v16 }
 0x101   :  { %v1281_v46 = vpop.f32.mrf.mxu2  ;;  %2002 = vmatpush.bf16.msrb.mxu2 %v4433_v30  ;;  %v5443_v30 = vld [vmem:[#allocation5 + $0x98] sm:$0xf0] }
 0x102   :  { %v1282_v61 = vadd.f32 %v1281_v46, %v1268_v45  ;;  %1969 = vmatpush.bf16.msra.mxu1 %v4301_v19  ;;  %v4405_v45 = vor.u32 %v5400_v40, %v4402_v41  ;;  %v5366_v46 = vld [vmem:[%s6408_s2 + $0x70] sm:$0xf0]  ;;  %v4676_v40 = vld [vmem:[#allocation5 + $0x168] sm:$0xf]  ;;  %v5470_v41 = vld [vmem:[#allocation5 + $0x170] sm:$0xf0] }
 0x104   :  { %1962 = vmatpush.bf16.msra.mxu0 %v4405_v45  ;;  %v5434_v45 = vld [vmem:[#allocation5 + $0x50] sm:$0xf0] }
 0x105   :  { %2003 = vmatpush.bf16.msrb.mxu2 %v4421_v39  ;;  %v4582_v39 = vld [vmem:[#allocation5 + $0xb4] sm:$0xf0] }
 0x106   :  { %v1293_v50 = vpop.f32.mrf.mxu3  ;;  %1970 = vmatpush.bf16.msra.mxu1 %v4289_v23  ;;  %v4568_v23 = vld [vmem:[#allocation5 + $0x90] sm:$0xf] }
 0x107   :  { %v1294_v62 = vadd.f32 %v1293_v50, %v1280_v51  ;;  %v4277_v50 = vor.u32 %v5369_v35, %v4276_v33  ;;  %v4265_v51 = vor.u32 %v5366_v46, %v4264_v43  ;;  %v4569_v31 = vor.u32 %v5443_v30, %v4568_v23  ;;  %v5440_v33 = vld [vmem:[#allocation5 + $0x80] sm:$0xf0]  ;;  %v4544_v35 = vld [vmem:[#allocation5 + $0x60] sm:$0xf]  ;;  %v5442_v46 = vld [vmem:[#allocation5 + $0x94] sm:$0xf] }
 0x108   :  { %v4557_v34 = vor.u32 %v5440_v33, %v4556_v32  ;;  %v4677_v43 = vor.u32 %v5470_v41, %v4676_v40  ;;  %v5466_v23 = vld [vmem:[#allocation5 + $0x154] sm:$0xf]  ;;  %v4666_v30 = vld [vmem:[#allocation5 + $0x15c] sm:$0xf0]  ;;  %v5455_v32 = vld [vmem:[#allocation5 + $0xf8] sm:$0xf0] }
 0x109   :  { %v1397_v7 = vmax.f32 %v1294_v62, 0.0  ;;  %2004 = vmatpush.bf16.msrb.mxu2 %v4409_v52  ;;  %v4573_v52 = vor.u32 %v5442_v46, %v4570_v48  ;;  %v4654_v40 = vld [vmem:[#allocation5 + $0x144] sm:$0xf0]  ;;  %v4604_v41 = vld [vmem:[#allocation5 + $0xd8] sm:$0xf] }
 0x10a   :  { %1971 = vmatpush.bf16.msra.mxu1 %v4277_v50  ;;  %v4545_v50 = vor.u32 %v5437_v36, %v4544_v35  ;;  %v4669_v35 = vor.u32 %v5466_v23, %v4666_v30  ;;  %v5427_v36 = vld [vmem:[#allocation5 + $0x1c] sm:$0xf]  ;;  %v5460_v48 = vld [vmem:[#allocation5 + $0x124] sm:$0xf]  ;;  %v5462_v23 = vld [vmem:[#allocation5 + $0x130] sm:$0xf0] }
 0x10d   :  { %v1335_v44 = vpop.f32.mrf.mxu0 }
 0x10e   :  { %v1295_v3 = vpop.f32.mrf.mxu3  ;;  %v1307_v29 = vpop.f32.mrf.mxu1  ;;  %1972 = vmatpush.bf16.msra.mxu1 %v4265_v51  ;;  %v5467_v51 = vld [vmem:[#allocation5 + $0x158] sm:$0xf0] }
 0x10f   :  { %v1296_v5 = vadd.f32 %v1295_v3, %v1282_v61  ;;  %v5357_v61 = vld [vmem:[%s6408_s2 + $0x28] sm:$0xf0]  ;;  %v4216_v3 = vld [vmem:[%s6408_s2 + $0x8] sm:$0xf] }
 0x110   :  { %v4229_v0 = vor.u32 %v5357_v61, %v4228_v37  ;;  %v4217_v6 = vor.u32 %v5354_v4, %v4216_v3  ;;  %v4521_v37 = vor.u32 %v5431_v56, %v4520_v55  ;;  %v4640_v3 = vld [vmem:[#allocation5 + $0x120] sm:$0xf]  ;;  %v5461_v4 = vld [vmem:[#allocation5 + $0x128] sm:$0xf0]  ;;  %v5471_v55 = vld [vmem:[#allocation5 + $0x178] sm:$0xf0] }
 0x111   :  { %v1400_v8 = vmax.f32 %v1296_v5, 0.0 }
 0x112   :  { %1973 = vmatpush.bf16.msra.mxu1 %v4253_v57  ;;  %v5439_v57 = vld [vmem:[#allocation5 + $0x7c] sm:$0xf] }
 0x113   :  { %v1403_v11 = vpack.c.bf16 %v1400_v8, %v1397_v7  ;;  %v4561_v61 = vor.u32 %v5439_v57, %v4558_v58  ;;  %v4592_v57 = vld [vmem:[#allocation5 + $0xc0] sm:$0xf]  ;;  %v5449_v58 = vld [vmem:[#allocation5 + $0xc8] sm:$0xf0] }
 0x115   :  { %1907 = vmatmul.bf16.vlgmr.msrb.gmra.mxu0 %v1403_v11  ;;  %1949 = vmatmul.bf16.vlgmr.msra.gmra.mxu2 %v1403_v11  ;;  %v1337_v62 = vpop.f32.mrf.mxu0 }
 0x116   :  { %1991 = vmatmul.bf16.vlgmr.msrb.gmra.mxu3 %v1403_v11  ;;  %v1309_v53 = vpop.f32.mrf.mxu1  ;;  %1974 = vmatpush.bf16.msra.mxu1 %v4241_v60  ;;  %v5464_v60 = vld [vmem:[#allocation5 + $0x140] sm:$0xf0] }
 0x119   :  { %v1349_v63 = vpop.f32.mrf.mxu2 }
 0x11a   :  { %v1321_v49 = vpop.f32.mrf.mxu3  ;;  %1975 = vmatpush.bf16.msra.mxu1 %v4229_v0  ;;  %v5436_v0 = vld [vmem:[#allocation5 + $0x64] sm:$0xf] }
 0x11b   :  { %v1322_v1 = vadd.f32 %v1321_v49, %v1307_v29  ;;  %v4581_v29 = vor.u32 %v5446_v28, %v4580_v27  ;;  %v4664_v49 = vld [vmem:[#allocation5 + $0x150] sm:$0xf]  ;;  %v5488_v27 = vld [vmem:[#allocation5 + $0x200] sm:$0xf0] }
 0x11d   :  { %v1336_v7 = vadd.f32 %v1335_v44, %v1322_v1  ;;  %v1391_v9 = vpop.f32.mrf.mxu0  ;;  %2500 = vmatpush.bf16.msrb.mxu0 %v4581_v29  ;;  %v4532_v44 = vld [vmem:[#allocation5 + $0x48] sm:$0xf]  ;;  %v4546_v1 = vld [vmem:[#allocation5 + $0x6c] sm:$0xf0]  ;;  %v4522_v29 = vld [vmem:[#allocation5 + $0x3c] sm:$0xf0] }
 0x11e   :  { %1976 = vmatpush.bf16.msra.mxu1 %v4217_v6  ;;  %v4533_v47 = vor.u32 %v5434_v45, %v4532_v44  ;;  %v5424_v45 = vld [vmem:[#allocation5 + $0x4] sm:$0xf] }
 0x11f   :  { %v1350_v11 = vadd.f32 %v1349_v63, %v1336_v7  ;;  %v4508_v63 = vld [vmem:[#allocation5 + $0x18] sm:$0xf]  ;;  %v4496_v7 = vld [vmem:[#allocation5] sm:$0xf] }
 0x121   :  { %v1351_v13 = vpop.f32.mrf.mxu2  ;;  %2501 = vmatpush.bf16.msrb.mxu0 %v4569_v31  ;;  %v4616_v31 = vld [vmem:[#allocation5 + $0xf0] sm:$0xf] }
 0x122   :  { %v1323_v42 = vpop.f32.mrf.mxu3 }
 0x123   :  { %v1324_v8 = vadd.f32 %v1323_v42, %v1309_v53  ;;  %v4665_v53 = vor.u32 %v5467_v51, %v4664_v49  ;;  %v5428_v42 = vld [vmem:[#allocation5 + $0x20] sm:$0xf0]  ;;  %v4642_v49 = vld [vmem:[#allocation5 + $0x12c] sm:$0xf0] }
 0x124   :  { %v4509_v6 = vor.u32 %v5428_v42, %v4508_v63 }
 0x125   :  { %v1338_v12 = vadd.f32 %v1337_v62, %v1324_v8  ;;  %v1393_v21 = vpop.f32.mrf.mxu0  ;;  %2502 = vmatpush.bf16.msrb.mxu0 %v4557_v34  ;;  %v4653_v62 = vor.u32 %v5464_v60, %v4652_v59  ;;  %v5425_v8 = vld [vmem:[#allocation5 + $0x8] sm:$0xf0]  ;;  %v4736_v59 = vld [vmem:[#allocation5 + $0x1e0] sm:$0xf]  ;;  %v4593_v60 = vor.u32 %v5449_v58, %v4592_v57  ;;  %v5456_v57 = vld [vmem:[#allocation5 + $0x100] sm:$0xf0] }
 0x127   :  { %v1352_v2 = vadd.f32 %v1351_v13, %v1338_v12  ;;  %v5433_v12 = vld [vmem:[#allocation5 + $0x4c] sm:$0xf]  ;;  %v4534_v13 = vld [vmem:[#allocation5 + $0x54] sm:$0xf0] }
 0x129   :  { %2503 = vmatpush.bf16.msrb.mxu0 %v4545_v50  ;;  %v4510_v50 = vld [vmem:[#allocation5 + $0x24] sm:$0xf0] }
 0x12d   :  { %2504 = vmatpush.bf16.msrb.mxu0 %v4533_v47  ;;  %v4498_v47 = vld [vmem:[#allocation5 + $0xc] sm:$0xf0] }
 0x12e   :  { %v1363_v5 = vpop.f32.mrf.mxu1  ;;  %v4501_v51 = vor.u32 %v5424_v45, %v4498_v47  ;;  %v5473_v45 = vld [vmem:[#allocation5 + $0x188] sm:$0xf0] }
 0x12f   :  { %v1364_v15 = vadd.f32 %v1363_v5, %v1350_v11  ;;  %v4772_v5 = vld [vmem:[#allocation5 + $0x228] sm:$0xf]  ;;  %v4641_v11 = vor.u32 %v5461_v4, %v4640_v3  ;;  %v4672_v4 = vld [vmem:[#allocation5 + $0x158] sm:$0xf]  ;;  %v5481_v47 = vld [vmem:[#allocation5 + $0x1cc] sm:$0xf] }
 0x131   :  { %2505 = vmatpush.bf16.msrb.mxu0 %v4521_v37  ;;  %v5485_v37 = vld [vmem:[#allocation5 + $0x1e8] sm:$0xf0] }
 0x132   :  { %v4737_v63 = vor.u32 %v5485_v37, %v4736_v59  ;;  %v5478_v59 = vld [vmem:[#allocation5 + $0x1b4] sm:$0xf]  ;;  %v4576_v37 = vld [vmem:[#allocation5 + $0x98] sm:$0xf] }
 0x135   :  { %2506 = vmatpush.bf16.msrb.mxu0 %v4509_v6 }
 0x136   :  { %v1365_v16 = vpop.f32.mrf.mxu1 }
 0x137   :  { %v1366_v17 = vadd.f32 %v1365_v16, %v1352_v2  ;;  %v4678_v2 = vld [vmem:[#allocation5 + $0x174] sm:$0xf0] }
 0x13a   :  { %v1377_v10 = vpop.f32.mrf.mxu3 }
 0x13b   :  { %v1378_v54 = vadd.f32 %v1377_v10, %v1364_v15  ;;  %v4549_v10 = vor.u32 %v5436_v0, %v4546_v1  ;;  %v5469_v15 = vld [vmem:[#allocation5 + $0x16c] sm:$0xf]  ;;  %v4630_v1 = vld [vmem:[#allocation5 + $0x114] sm:$0xf0] }
 0x13c   :  { %v5457_v0 = vld [vmem:[#allocation5 + $0x10c] sm:$0xf] }
 0x13d   :  { %v1392_v19 = vadd.f32 %v1391_v9, %v1378_v54  ;;  %v5494_v9 = vld [vmem:[#allocation5 + $0x230] sm:$0xf0]  ;;  %v4760_v54 = vld [vmem:[#allocation5 + $0x210] sm:$0xf]  ;;  %v4633_v3 = vor.u32 %v5457_v0, %v4630_v1  ;;  %v5453_v0 = vld [vmem:[#allocation5 + $0xe8] sm:$0xf0] }
 0x13e   :  { %v4773_v16 = vor.u32 %v5494_v9, %v4772_v5  ;;  %v5468_v5 = vld [vmem:[#allocation5 + $0x160] sm:$0xf0] }
 0x13f   :  { %v1398_v24 = vmax.f32 %v1392_v19, 0.0  ;;  %v5458_v19 = vld [vmem:[#allocation5 + $0x110] sm:$0xf0]  ;;  %v4673_v6 = vor.u32 %v5468_v5, %v4672_v4  ;;  %v5475_v4 = vld [vmem:[#allocation5 + $0x19c] sm:$0xf] }
 0x140   :  { %2528 = vmatpush.bf16.msra.mxu3 %v4773_v16  ;;  %v4702_v5 = vld [vmem:[#allocation5 + $0x1a4] sm:$0xf0] }
 0x142   :  { %v1379_v18 = vpop.f32.mrf.mxu3 }
 0x143   :  { %v1380_v20 = vadd.f32 %v1379_v18, %v1366_v17  ;;  %v5491_v17 = vld [vmem:[#allocation5 + $0x218] sm:$0xf0]  ;;  %v4628_v18 = vld [vmem:[#allocation5 + $0x108] sm:$0xf] }
 0x144   :  { %v4629_v28 = vor.u32 %v5458_v19, %v4628_v18  ;;  %v4712_v18 = vld [vmem:[#allocation5 + $0x1b0] sm:$0xf]  ;;  %v5479_v19 = vld [vmem:[#allocation5 + $0x1b8] sm:$0xf0] }
 0x145   :  { %v1394_v22 = vadd.f32 %v1393_v21, %v1380_v20  ;;  %v4761_v20 = vor.u32 %v5491_v17, %v4760_v54  ;;  %v4497_v21 = vor.u32 %v5425_v8, %v4496_v7  ;;  %v4724_v7 = vld [vmem:[#allocation5 + $0x1c8] sm:$0xf]  ;;  %v5482_v8 = vld [vmem:[#allocation5 + $0x1d0] sm:$0xf0]  ;;  %v5465_v54 = vld [vmem:[#allocation5 + $0x148] sm:$0xf0] }
 0x146   :  { %v4725_v9 = vor.u32 %v5482_v8, %v4724_v7  ;;  %v4705_v7 = vor.u32 %v5475_v4, %v4702_v5  ;;  %v5441_v8 = vld [vmem:[#allocation5 + $0x88] sm:$0xf0]  ;;  %v5515_v4 = vld [vmem:[#allocation7 + $0x98] sm:$0xf0] }
 0x147   :  { %v1401_v25 = vmax.f32 %v1394_v22, 0.0  ;;  %v4537_v22 = vor.u32 %v5433_v12, %v4534_v13  ;;  %2529 = vmatpush.bf16.msra.mxu3 %v4761_v20  ;;  %2507 = vmatpush.bf16.msrb.mxu0 %v4497_v21  ;;  %v5454_v13 = vld [vmem:[#allocation5 + $0xf4] sm:$0xf]  ;;  %v4713_v21 = vor.u32 %v5479_v19, %v4712_v18 }
 0x148   :  { %v5438_v18 = vld [vmem:[#allocation5 + $0x70] sm:$0xf0] }
 0x149   :  { %v1404_v26 = vpack.c.bf16 %v1401_v25, %v1398_v24  ;;  %v4681_v24 = vor.u32 %v5469_v15, %v4678_v2  ;;  %v5430_v25 = vld [vmem:[#allocation5 + $0x34] sm:$0xf]  ;;  %v4618_v15 = vld [vmem:[#allocation5 + $0xfc] sm:$0xf0] }
 0x14a   :  { %v4525_v34 = vor.u32 %v5430_v25, %v4522_v29  ;;  %v4621_v16 = vor.u32 %v5454_v13, %v4618_v15  ;;  %v4660_v2 = vld [vmem:[#allocation5 + $0x140] sm:$0xf]  ;;  %v4648_v29 = vld [vmem:[#allocation5 + $0x128] sm:$0xf] }
 0x14b   :  { %1921 = vmatmul.bf16.vlgmr.msrb.gmra.mxu1 %v1404_v26  ;;  %1963 = vmatmul.bf16.vlgmr.msra.gmra.mxu0 %v1404_v26  ;;  %v4661_v17 = vor.u32 %v5465_v54, %v4660_v2  ;;  %v4649_v30 = vor.u32 %v5462_v23, %v4648_v29  ;;  %v4690_v2 = vld [vmem:[#allocation5 + $0x18c] sm:$0xf0]  ;;  %v4552_v54 = vld [vmem:[#allocation5 + $0x68] sm:$0xf]  ;;  %v5432_v29 = vld [vmem:[#allocation5 + $0x40] sm:$0xf0] }
 0x14c   :  { %2005 = vmatmul.bf16.vlgmr.msrb.gmra.mxu2 %v1404_v26  ;;  %2514 = vmatpush.bf16.msrb.mxu1 %v4677_v43  ;;  %v4748_v26 = vld [vmem:[#allocation5 + $0x1f8] sm:$0xf]  ;;  %v4513_v43 = vor.u32 %v5427_v36, %v4510_v50  ;;  %v4594_v50 = vld [vmem:[#allocation5 + $0xcc] sm:$0xf0]  ;;  %v4553_v19 = vor.u32 %v5438_v18, %v4552_v54  ;;  %v5483_v18 = vld [vmem:[#allocation5 + $0x1d8] sm:$0xf0] }
 0x14d   :  { %v4749_v33 = vor.u32 %v5488_v27, %v4748_v26  ;;  %2556 = vmatpush.bf16.msra.mxu0 %v4681_v24  ;;  %v4750_v24 = vld [vmem:[#allocation5 + $0x204] sm:$0xf0]  ;;  %v5451_v26 = vld [vmem:[#allocation5 + $0xdc] sm:$0xf] }
 0x14e   :  { %v4606_v27 = vld [vmem:[#allocation5 + $0xe4] sm:$0xf0] }
 0x14f   :  { %2530 = vmatpush.bf16.msra.mxu3 %v4749_v33 }
 0x150   :  { %2515 = vmatpush.bf16.msrb.mxu1 %v4665_v53  ;;  %v4684_v53 = vld [vmem:[#allocation5 + $0x170] sm:$0xf] }
 0x151   :  { %2557 = vmatpush.bf16.msra.mxu0 %v4669_v35  ;;  %v4685_v56 = vor.u32 %v5471_v55, %v4684_v53  ;;  %v4738_v35 = vld [vmem:[#allocation5 + $0x1ec] sm:$0xf0] }
 0x153   :  { %2531 = vmatpush.bf16.msra.mxu3 %v4737_v63 }
 0x154   :  { %2516 = vmatpush.bf16.msrb.mxu1 %v4653_v62  ;;  %v4774_v62 = vld [vmem:[#allocation5 + $0x234] sm:$0xf0] }
 0x157   :  { %2532 = vmatpush.bf16.msra.mxu3 %v4725_v9 }
 0x158   :  { %2517 = vmatpush.bf16.msrb.mxu1 %v4641_v11  ;;  %v4762_v11 = vld [vmem:[#allocation5 + $0x21c] sm:$0xf0] }
 0x15b   :  { %1977 = vmatmul.bf16.vlgmr.msra.gmra.mxu1 %v6015_v14  ;;  %v4585_v14 = vor.u32 %v5445_v38, %v4582_v39  ;;  %v4617_v38 = vor.u32 %v5455_v32, %v4616_v31  ;;  %v5463_v39 = vld [vmem:[#allocation5 + $0x13c] sm:$0xf]  ;;  %2533 = vmatpush.bf16.msra.mxu3 %v4713_v21  ;;  %v4700_v31 = vld [vmem:[#allocation5 + $0x198] sm:$0xf]  ;;  %v5476_v32 = vld [vmem:[#allocation5 + $0x1a0] sm:$0xf0] }
 0x15c   :  { %2518 = vmatpush.bf16.msrb.mxu1 %v4629_v28  ;;  %v4657_v44 = vor.u32 %v5463_v39, %v4654_v40  ;;  %v4609_v28 = vor.u32 %v5451_v26, %v4606_v27  ;;  %v4701_v33 = vor.u32 %v5476_v32, %v4700_v31 }
 0x15d   :  { %2542 = vmatpush.bf16.msra.mxu2 %v4585_v14  ;;  %v5452_v14 = vld [vmem:[#allocation5 + $0xe0] sm:$0xf0] }
 0x15e   :  { %v4605_v46 = vor.u32 %v5452_v14, %v4604_v41  ;;  %2558 = vmatpush.bf16.msra.mxu0 %v4657_v44  ;;  %v4636_v41 = vld [vmem:[#allocation5 + $0x110] sm:$0xf]  ;;  %v5459_v14 = vld [vmem:[#allocation5 + $0x118] sm:$0xf0]  ;;  %v4688_v44 = vld [vmem:[#allocation5 + $0x180] sm:$0xf] }
 0x15f   :  { %2534 = vmatpush.bf16.msra.mxu3 %v4701_v33 }
 0x160   :  { %2519 = vmatpush.bf16.msrb.mxu1 %v4617_v38  ;;  %v5448_v38 = vld [vmem:[#allocation5 + $0xc4] sm:$0xf] }
 0x161   :  { %2543 = vmatpush.bf16.msra.mxu2 %v4573_v52  ;;  %v4645_v52 = vor.u32 %v5460_v48, %v4642_v49  ;;  %v4597_v40 = vor.u32 %v5448_v38, %v4594_v50  ;;  %v4726_v48 = vld [vmem:[#allocation5 + $0x1d4] sm:$0xf0]  ;;  %v4588_v49 = vld [vmem:[#allocation5 + $0xb0] sm:$0xf] }
 0x163   :  { %2559 = vmatpush.bf16.msra.mxu0 %v4645_v52  ;;  %v6287_v20 = vpop.f32.mrf.mxu2  ;;  %v5447_v52 = vld [vmem:[#allocation5 + $0xb8] sm:$0xf0] }
 0x164   :  { %2520 = vmatpush.bf16.msrb.mxu1 %v4605_v46  ;;  %v4689_v46 = vor.u32 %v5473_v45, %v4688_v44  ;;  %v4589_v55 = vor.u32 %v5447_v52, %v4588_v49  ;;  %v1936_v15 = vpop.f32.mrf.mxu3  ;;  %v4780_v44 = vld [vmem:[#allocation5 + $0x230] sm:$0xf]  ;;  %v5495_v45 = vld [vmem:[#allocation5 + $0x238] sm:$0xf0]  ;;  %v5426_v52 = vld [vmem:[#allocation5 + $0x10] sm:$0xf0] }
 0x165   :  { %2544 = vmatpush.bf16.msra.mxu2 %v4561_v61  ;;  %v5493_v61 = vld [vmem:[#allocation5 + $0x22c] sm:$0xf]  ;;  %v4781_v49 = vor.u32 %v5495_v45, %v4780_v44  ;;  %v4870_v45 = vld [vmem:[#allocation7 + $0xb4] sm:$0xf0] }
 0x166   :  { %v4777_v42 = vor.u32 %v5493_v61, %v4774_v62  ;;  %2535 = vmatpush.bf16.msra.mxu3 %v4689_v46  ;;  %v5444_v62 = vld [vmem:[#allocation5 + $0xa0] sm:$0xf0]  ;;  %v5517_v44 = vld [vmem:[#allocation7 + $0xac] sm:$0xf] }
 0x167   :  { %2560 = vmatpush.bf16.msra.mxu0 %v4633_v3  ;;  %v4577_v63 = vor.u32 %v5444_v62, %v4576_v37  ;;  %v4756_v62 = vld [vmem:[#allocation5 + $0x200] sm:$0xf] }
 0x168   :  { %2521 = vmatpush.bf16.msrb.mxu1 %v4593_v60  ;;  %v4714_v60 = vld [vmem:[#allocation5 + $0x1bc] sm:$0xf0] }
 0x169   :  { %2545 = vmatpush.bf16.msra.mxu2 %v4549_v10  ;;  %v5490_v10 = vld [vmem:[#allocation5 + $0x214] sm:$0xf]  ;;  %v4717_v61 = vor.u32 %v5478_v59, %v4714_v60 }
 0x16a   :  { %v4765_v12 = vor.u32 %v5490_v10, %v4762_v11  ;;  %2584 = vmatpush.bf16.msrb.mxu3 %v4589_v55  ;;  %v4600_v11 = vld [vmem:[#allocation5 + $0xc8] sm:$0xf] }
 0x16b   :  { %2561 = vmatpush.bf16.msra.mxu0 %v4621_v16  ;;  %v1896_v53 = vpop.f32.mrf.mxu2  ;;  %v5472_v16 = vld [vmem:[#allocation5 + $0x184] sm:$0xf] }
 0x16c   :  { %2570 = vmatpush.bf16.msra.mxu1 %v4777_v42  ;;  %v4612_v42 = vld [vmem:[#allocation5 + $0xe0] sm:$0xf]  ;;  %v1938_v32 = vpop.f32.mrf.mxu3 }
 0x16d   :  { %2546 = vmatpush.bf16.msra.mxu2 %v4537_v22  ;;  %v5487_v22 = vld [vmem:[#allocation5 + $0x1fc] sm:$0xf]  ;;  %v4613_v1 = vor.u32 %v5453_v0, %v4612_v42  ;;  %v4868_v42 = vld [vmem:[#allocation7 + $0xa8] sm:$0xf]  ;;  %v5518_v0 = vld [vmem:[#allocation7 + $0xb0] sm:$0xf0] }
 0x16e   :  { %v4753_v25 = vor.u32 %v5487_v22, %v4750_v24  ;;  %2585 = vmatpush.bf16.msrb.mxu3 %v4577_v63  ;;  %v4540_v24 = vld [vmem:[#allocation5 + $0x50] sm:$0xf]  ;;  %v5489_v63 = vld [vmem:[#allocation5 + $0x208] sm:$0xf0] }
 0x16f   :  { %2562 = vmatpush.bf16.msra.mxu0 %v4609_v28  ;;  %v4528_v28 = vld [vmem:[#allocation5 + $0x38] sm:$0xf]  ;;  %v4757_v5 = vor.u32 %v5489_v63, %v4756_v62 }
 0x170   :  { %2571 = vmatpush.bf16.msra.mxu1 %v4765_v12  ;;  %v5450_v12 = vld [vmem:[#allocation5 + $0xd0] sm:$0xf0]  ;;  %v4529_v31 = vor.u32 %v5432_v29, %v4528_v28  ;;  %v4796_v63 = vld [vmem:[#allocation7 + $0x18] sm:$0xf] }
 0x171   :  { %2547 = vmatpush.bf16.msra.mxu2 %v4525_v34  ;;  %v5484_v34 = vld [vmem:[#allocation5 + $0x1e4] sm:$0xf]  ;;  %v4601_v13 = vor.u32 %v5450_v12, %v4600_v11 }
 0x172   :  { %v4741_v36 = vor.u32 %v5484_v34, %v4738_v35  ;;  %v5512_v11 = vld [vmem:[#allocation7 + $0x80] sm:$0xf0] }
 0x173   :  { %2563 = vmatpush.bf16.msra.mxu0 %v4597_v40  ;;  %v4516_v40 = vld [vmem:[#allocation5 + $0x20] sm:$0xf] }
 0x174   :  { %2572 = vmatpush.bf16.msra.mxu1 %v4753_v25  ;;  %v5435_v25 = vld [vmem:[#allocation5 + $0x58] sm:$0xf0] }
 0x175   :  { %2548 = vmatpush.bf16.msra.mxu2 %v4513_v43  ;;  %v4637_v43 = vor.u32 %v5459_v14, %v4636_v41  ;;  %v4541_v26 = vor.u32 %v5435_v25, %v4540_v24  ;;  %v5429_v41 = vld [vmem:[#allocation5 + $0x28] sm:$0xf0]  ;;  %v4964_v25 = vld [vmem:[#allocation7 + $0x168] sm:$0xf] }
 0x176   :  { %v4517_v46 = vor.u32 %v5429_v41, %v4516_v40  ;;  %v5509_v24 = vld [vmem:[#allocation7 + $0x68] sm:$0xf0] }
 0x178   :  { %2573 = vmatpush.bf16.msra.mxu1 %v4741_v36 }
 0x179   :  { %2549 = vmatpush.bf16.msra.mxu2 %v4501_v51  ;;  %v4729_v51 = vor.u32 %v5481_v47, %v4726_v48 }
 0x17c   :  { %2574 = vmatpush.bf16.msra.mxu1 %v4729_v51  ;;  %v4504_v51 = vld [vmem:[#allocation5 + $0x8] sm:$0xf] }
 0x17d   :  { %2598 = vmatpush.bf16.msrb.mxu2 %v4685_v56  ;;  %v4624_v56 = vld [vmem:[#allocation5 + $0xf8] sm:$0xf] }
 0x17e   :  { %v4625_v58 = vor.u32 %v5456_v57, %v4624_v56  ;;  %v4768_v56 = vld [vmem:[#allocation5 + $0x218] sm:$0xf]  ;;  %v5492_v57 = vld [vmem:[#allocation5 + $0x220] sm:$0xf0] }
 0x180   :  { %2575 = vmatpush.bf16.msra.mxu1 %v4717_v61  ;;  %v4769_v61 = vor.u32 %v5492_v57, %v4768_v56  ;;  %v5503_v56 = vld [vmem:[#allocation7 + $0x38] sm:$0xf0] }
 0x181   :  { %2599 = vmatpush.bf16.msrb.mxu2 %v4673_v6  ;;  %v4564_v6 = vld [vmem:[#allocation5 + $0x80] sm:$0xf] }
 0x182   :  { %v4565_v10 = vor.u32 %v5441_v8, %v4564_v6  ;;  %v4744_v6 = vld [vmem:[#allocation5 + $0x1e8] sm:$0xf] }
 0x184   :  { %2576 = vmatpush.bf16.msra.mxu1 %v4705_v7  ;;  %2586 = vmatpush.bf16.msrb.mxu3 %v4565_v10  ;;  %v4844_v10 = vld [vmem:[#allocation7 + $0x78] sm:$0xf] }
 0x185   :  { %2600 = vmatpush.bf16.msrb.mxu2 %v4661_v17  ;;  %v4693_v17 = vor.u32 %v5472_v16, %v4690_v2  ;;  %v4845_v16 = vor.u32 %v5512_v11, %v4844_v10  ;;  %v5505_v10 = vld [vmem:[#allocation7 + $0x4c] sm:$0xf]  ;;  %v4822_v11 = vld [vmem:[#allocation7 + $0x54] sm:$0xf0] }
 0x188   :  { %2577 = vmatpush.bf16.msra.mxu1 %v4693_v17  ;;  %2587 = vmatpush.bf16.msrb.mxu3 %v4553_v19  ;;  %v4732_v17 = vld [vmem:[#allocation5 + $0x1d0] sm:$0xf] }
 0x189   :  { %2601 = vmatpush.bf16.msrb.mxu2 %v4649_v30 }
 0x18c   :  { %2588 = vmatpush.bf16.msrb.mxu3 %v4541_v26  ;;  %v5542_v26 = vld [vmem:[#allocation7 + $0x170] sm:$0xf0] }
 0x18d   :  { %2602 = vmatpush.bf16.msrb.mxu2 %v4637_v43 }
 0x190   :  { %2589 = vmatpush.bf16.msrb.mxu3 %v4529_v31 }
 0x191   :  { %2603 = vmatpush.bf16.msrb.mxu2 %v4625_v58  ;;  %v4505_v58 = vor.u32 %v5426_v52, %v4504_v51  ;;  %v5539_v51 = vld [vmem:[#allocation7 + $0x158] sm:$0xf0] }
 0x192   :  { %v6289_v39 = vpop.f32.mrf.mxu0 }
 0x193   :  { %v1909_v23 = vadd.f32 %v6289_v39, %v6287_v20 }
 0x194   :  { %2590 = vmatpush.bf16.msrb.mxu3 %v4517_v46 }
 0x195   :  { %2604 = vmatpush.bf16.msrb.mxu2 %v4613_v1  ;;  %v4856_v1 = vld [vmem:[#allocation7 + $0x90] sm:$0xf] }
 0x196   :  { %v4857_v7 = vor.u32 %v5515_v4, %v4856_v1  ;;  %v4834_v1 = vld [vmem:[#allocation7 + $0x6c] sm:$0xf0]  ;;  %v4928_v4 = vld [vmem:[#allocation7 + $0x120] sm:$0xf] }
 0x198   :  { %v1950_v9 = vpop.f32.mrf.mxu2  ;;  %2591 = vmatpush.bf16.msrb.mxu3 %v4505_v58  ;;  %v5511_v58 = vld [vmem:[#allocation7 + $0x7c] sm:$0xf] }
 0x199   :  { %2605 = vmatpush.bf16.msrb.mxu2 %v4601_v13  ;;  %v1951_v30 = vadd.f32 %v1950_v9, %v1936_v15  ;;  %v1992_v59 = vpop.f32.mrf.mxu3  ;;  %v5486_v9 = vld [vmem:[#allocation5 + $0x1f0] sm:$0xf0] }
 0x19a   :  { %v1910_v3 = vpop.f32.mrf.mxu0  ;;  %v4745_v15 = vor.u32 %v5486_v9, %v4744_v6 }
 0x19b   :  { %v1911_v33 = vadd.f32 %v1910_v3, %v1896_v53  ;;  %v4869_v3 = vor.u32 %v5518_v0, %v4868_v42  ;;  %v5500_v42 = vld [vmem:[#allocation7 + $0x20] sm:$0xf0] }
 0x19c   :  { %v4797_v0 = vor.u32 %v5500_v42, %v4796_v63 }
 0x1a0   :  { %v1952_v27 = vpop.f32.mrf.mxu2 }
 0x1a1   :  { %v1953_v34 = vadd.f32 %v1952_v27, %v1938_v32  ;;  %v1994_v12 = vpop.f32.mrf.mxu3  ;;  %v4733_v27 = vor.u32 %v5483_v18, %v4732_v17  ;;  %v4965_v32 = vor.u32 %v5542_v26, %v4964_v25  ;;  %v5060_v18 = vld [vmem:[#allocation7 + $0x228] sm:$0xf]  ;;  %v5538_v25 = vld [vmem:[#allocation7 + $0x154] sm:$0xf] }
 0x1c8   :  { %v1922_v21 = vpop.f32.mrf.mxu1  ;;  %v1964_v22 = vpop.f32.mrf.mxu0 }
 0x1c9   :  { %v1923_v35 = vadd.f32 %v1922_v21, %v1909_v23  ;;  %v1965_v36 = vadd.f32 %v1964_v22, %v1951_v30  ;;  %v4832_v21 = vld [vmem:[#allocation7 + $0x60] sm:$0xf]  ;;  %v4720_v23 = vld [vmem:[#allocation5 + $0x1b8] sm:$0xf]  ;;  %v5480_v30 = vld [vmem:[#allocation5 + $0x1c0] sm:$0xf0] }
 0x1ca   :  { %v4833_v31 = vor.u32 %v5509_v24, %v4832_v21  ;;  %v4810_v24 = vld [vmem:[#allocation7 + $0x3c] sm:$0xf0] }
 0x1cb   :  { %v2011_v47 = vmax.f32 %v1923_v35, 0.0  ;;  %v2012_v48 = vmax.f32 %v1965_v36, 0.0  ;;  %v5506_v35 = vld [vmem:[#allocation7 + $0x50] sm:$0xf0]  ;;  %v4721_v36 = vor.u32 %v5480_v30, %v4720_v23  ;;  %v5527_v23 = vld [vmem:[#allocation7 + $0xf8] sm:$0xf0] }
 0x1cc   :  { %v5048_v30 = vld [vmem:[#allocation7 + $0x210] sm:$0xf] }
 0x1cf   :  { %v2006_v60 = vpop.f32.mrf.mxu2 }
 0x1d0   :  { %v1924_v38 = vpop.f32.mrf.mxu1  ;;  %v1966_v50 = vpop.f32.mrf.mxu0 }
 0x1d1   :  { %v1925_v14 = vadd.f32 %v1924_v38, %v1911_v33  ;;  %v1967_v43 = vadd.f32 %v1966_v50, %v1953_v34  ;;  %v4820_v34 = vld [vmem:[#allocation7 + $0x48] sm:$0xf]  ;;  %v4708_v38 = vld [vmem:[#allocation5 + $0x1a0] sm:$0xf]  ;;  %v5477_v50 = vld [vmem:[#allocation5 + $0x1a8] sm:$0xf0] }
 0x1d2   :  { %v4821_v40 = vor.u32 %v5506_v35, %v4820_v34  ;;  %v4709_v41 = vor.u32 %v5477_v50, %v4708_v38  ;;  %v5499_v34 = vld [vmem:[#allocation7 + $0x1c] sm:$0xf]  ;;  %v4798_v35 = vld [vmem:[#allocation7 + $0x24] sm:$0xf0] }
 0x1d3   :  { %v2014_v20 = vmax.f32 %v1925_v14, 0.0  ;;  %v2015_v39 = vmax.f32 %v1967_v43, 0.0  ;;  %v4696_v14 = vld [vmem:[#allocation5 + $0x188] sm:$0xf]  ;;  %v5474_v43 = vld [vmem:[#allocation5 + $0x190] sm:$0xf0]  ;;  %v4801_v38 = vor.u32 %v5499_v34, %v4798_v35 }
 0x1d4   :  { %v4697_v46 = vor.u32 %v5474_v43, %v4696_v14  ;;  %v4942_v50 = vld [vmem:[#allocation7 + $0x144] sm:$0xf0]  ;;  %v5524_v14 = vld [vmem:[#allocation7 + $0xe0] sm:$0xf0]  ;;  %v5036_v43 = vld [vmem:[#allocation7 + $0x1f8] sm:$0xf] }
 0x1d5   :  { %v6293_v53 = vpack.c.bf16 %v2014_v20, %v2011_v47  ;;  %v2018_v55 = vpack.c.bf16 %v2015_v39, %v2012_v48  ;;  %v4873_v47 = vor.u32 %v5517_v44, %v4870_v45  ;;  %v5514_v48 = vld [vmem:[#allocation7 + $0x94] sm:$0xf]  ;;  %v4858_v20 = vld [vmem:[#allocation7 + $0x9c] sm:$0xf0]  ;;  %v5560_v45 = vld [vmem:[#allocation7 + $0x200] sm:$0xf0] }
 0x1d6   :  { %v4861_v39 = vor.u32 %v5514_v48, %v4858_v20  ;;  %v4786_v48 = vld [vmem:[#allocation7 + $0xc] sm:$0xf0]  ;;  %v5532_v20 = vld [vmem:[#allocation7 + $0x124] sm:$0xf] }
 0x1d7   :  { %2508 = vmatmul.bf16.vlgmr.msrb.gmra.mxu0 %v6293_v53  ;;  %2522 = vmatmul.bf16.vlgmr.msrb.gmra.mxu1 %v2018_v55  ;;  %v2008_v19 = vpop.f32.mrf.mxu2  ;;  %v5556_v35 = vld [vmem:[#allocation7 + $0x1e4] sm:$0xf] }
 0x1d8   :  { %2550 = vmatmul.bf16.vlgmr.msra.gmra.mxu2 %v6293_v53  ;;  %v1978_v37 = vpop.f32.mrf.mxu1  ;;  %2612 = vmatpush.bf16.msrb.mxu0 %v4781_v49  ;;  %v4952_v49 = vld [vmem:[#allocation7 + $0x150] sm:$0xf] }
 0x1d9   :  { %3115 = vmatpush.bf16.msrb.mxu1 %v4869_v3  ;;  %v1993_v8 = vadd.f32 %v1992_v59, %v1978_v37  ;;  %v4953_v52 = vor.u32 %v5539_v51, %v4952_v49  ;;  %v4846_v59 = vld [vmem:[#allocation7 + $0x84] sm:$0xf0]  ;;  %v4930_v49 = vld [vmem:[#allocation7 + $0x12c] sm:$0xf0] }
 0x1da   :  { %v4849_v37 = vor.u32 %v5511_v58, %v4846_v59  ;;  %v4972_v51 = vld [vmem:[#allocation7 + $0x170] sm:$0xf]  ;;  %v5521_v58 = vld [vmem:[#allocation7 + $0xc8] sm:$0xf0]  ;;  %v5024_v59 = vld [vmem:[#allocation7 + $0x1e0] sm:$0xf] }
 0x1db   :  { %v2007_v2 = vadd.f32 %v2006_v60, %v1993_v8  ;;  %v4940_v60 = vld [vmem:[#allocation7 + $0x138] sm:$0xf]  ;;  %v5497_v8 = vld [vmem:[#allocation7 + $0x8] sm:$0xf0] }
 0x1dc   :  { %2613 = vmatpush.bf16.msrb.mxu0 %v4769_v61  ;;  %v5536_v61 = vld [vmem:[#allocation7 + $0x140] sm:$0xf0] }
 0x1dd   :  { %3116 = vmatpush.bf16.msrb.mxu1 %v4857_v7  ;;  %v2013_v28 = vmax.f32 %v2007_v2, 0.0  ;;  %v4941_v62 = vor.u32 %v5536_v61, %v4940_v60  ;;  %v4784_v7 = vld [vmem:[#allocation7] sm:$0xf]  ;;  %v5530_v2 = vld [vmem:[#allocation7 + $0x110] sm:$0xf0] }
 0x1de   :  { %v4785_v9 = vor.u32 %v5497_v8, %v4784_v7  ;;  %v5565_v61 = vld [vmem:[#allocation7 + $0x22c] sm:$0xf]  ;;  %v5554_v7 = vld [vmem:[#allocation7 + $0x1d0] sm:$0xf0] }
 0x1e0   :  { %v1980_v13 = vpop.f32.mrf.mxu1  ;;  %2614 = vmatpush.bf16.msrb.mxu0 %v4757_v5  ;;  %v5533_v5 = vld [vmem:[#allocation7 + $0x128] sm:$0xf0] }
 0x1e1   :  { %v1995_v54 = vadd.f32 %v1994_v12, %v1980_v13  ;;  %3117 = vmatpush.bf16.msrb.mxu1 %v4845_v16  ;;  %v4929_v6 = vor.u32 %v5533_v5, %v4928_v4  ;;  %v5541_v12 = vld [vmem:[#allocation7 + $0x16c] sm:$0xf]  ;;  %v4825_v13 = vor.u32 %v5505_v10, %v4822_v11  ;;  %v4916_v16 = vld [vmem:[#allocation7 + $0x108] sm:$0xf]  ;;  %v5540_v4 = vld [vmem:[#allocation7 + $0x160] sm:$0xf0] }
 0x1e2   :  { %v4917_v17 = vor.u32 %v5530_v2, %v4916_v16  ;;  %v5050_v10 = vld [vmem:[#allocation7 + $0x21c] sm:$0xf0]  ;;  %v5537_v2 = vld [vmem:[#allocation7 + $0x148] sm:$0xf0] }
 0x1e3   :  { %v2009_v22 = vadd.f32 %v2008_v19, %v1995_v54  ;;  %v5566_v19 = vld [vmem:[#allocation7 + $0x230] sm:$0xf0]  ;;  %v4948_v16 = vld [vmem:[#allocation7 + $0x140] sm:$0xf] }
 0x1e4   :  { %2615 = vmatpush.bf16.msrb.mxu0 %v4745_v15  ;;  %v4966_v15 = vld [vmem:[#allocation7 + $0x174] sm:$0xf0]  ;;  %v5061_v21 = vor.u32 %v5566_v19, %v5060_v18  ;;  %v5551_v18 = vld [vmem:[#allocation7 + $0x1b8] sm:$0xf0] }
 0x1e5   :  { %v2016_v29 = vmax.f32 %v2009_v22, 0.0  ;;  %3118 = vmatpush.bf16.msrb.mxu1 %v4833_v31  ;;  %v4969_v54 = vor.u32 %v5541_v12, %v4966_v15  ;;  %v5502_v22 = vld [vmem:[#allocation7 + $0x34] sm:$0xf] }
 0x1e6   :  { %3143 = vmatpush.bf16.msra.mxu2 %v5061_v21  ;;  %v4813_v26 = vor.u32 %v5502_v22, %v4810_v24  ;;  %v5526_v12 = vld [vmem:[#allocation7 + $0xf4] sm:$0xf]  ;;  %v5559_v24 = vld [vmem:[#allocation7 + $0x1fc] sm:$0xf] }
 0x1e7   :  { %v2019_v33 = vpack.c.bf16 %v2016_v29, %v2013_v28  ;;  %2564 = vmatmul.bf16.vlgmr.msra.gmra.mxu0 %v2018_v55  ;;  %v4904_v29 = vld [vmem:[#allocation7 + $0xf0] sm:$0xf] }
 0x1e8   :  { %2606 = vmatmul.bf16.vlgmr.msrb.gmra.mxu2 %v2018_v55  ;;  %2616 = vmatpush.bf16.msrb.mxu0 %v4733_v27  ;;  %v4808_v55 = vld [vmem:[#allocation7 + $0x30] sm:$0xf]  ;;  %v4954_v27 = vld [vmem:[#allocation7 + $0x15c] sm:$0xf0]  ;;  %v4905_v31 = vor.u32 %v5527_v23, %v4904_v29  ;;  %v4936_v23 = vld [vmem:[#allocation7 + $0x128] sm:$0xf] }
 0x1e9   :  { %2536 = vmatmul.bf16.vlgmr.msra.gmra.mxu3 %v2019_v33  ;;  %2578 = vmatmul.bf16.vlgmr.msra.gmra.mxu1 %v2019_v33  ;;  %v4809_v57 = vor.u32 %v5503_v56, %v4808_v55  ;;  %v4957_v28 = vor.u32 %v5538_v25, %v4954_v27  ;;  %v4933_v55 = vor.u32 %v5532_v20, %v4930_v49  ;;  %v5038_v25 = vld [vmem:[#allocation7 + $0x204] sm:$0xf0]  ;;  %v5523_v27 = vld [vmem:[#allocation7 + $0xdc] sm:$0xf]  ;;  %v5553_v20 = vld [vmem:[#allocation7 + $0x1cc] sm:$0xf] }
 0x1ea   :  { %3129 = vmatpush.bf16.msra.mxu3 %v4965_v32  ;;  %3119 = vmatpush.bf16.msrb.mxu1 %v4821_v40  ;;  %v5563_v32 = vld [vmem:[#allocation7 + $0x218] sm:$0xf0]  ;;  %v4876_v49 = vld [vmem:[#allocation7 + $0xb0] sm:$0xf] }
 0x1ec   :  { %2617 = vmatpush.bf16.msrb.mxu0 %v4721_v36  ;;  %v5535_v36 = vld [vmem:[#allocation7 + $0x13c] sm:$0xf] }
 0x1ed   :  { %v4945_v40 = vor.u32 %v5535_v36, %v4942_v50  ;;  %v5026_v36 = vld [vmem:[#allocation7 + $0x1ec] sm:$0xf0]  ;;  %v5520_v50 = vld [vmem:[#allocation7 + $0xc4] sm:$0xf] }
 0x1ee   :  { %3130 = vmatpush.bf16.msra.mxu3 %v4953_v52  ;;  %3120 = vmatpush.bf16.msrb.mxu1 %v4809_v57  ;;  %v5543_v52 = vld [vmem:[#allocation7 + $0x178] sm:$0xf0]  ;;  %v4880_v57 = vld [vmem:[#allocation7 + $0xc0] sm:$0xf] }
 0x1ef   :  { %v4973_v56 = vor.u32 %v5543_v52, %v4972_v51  ;;  %v4881_v60 = vor.u32 %v5521_v58, %v4880_v57  ;;  %v5519_v52 = vld [vmem:[#allocation7 + $0xb8] sm:$0xf0]  ;;  %v4912_v57 = vld [vmem:[#allocation7 + $0xf8] sm:$0xf]  ;;  %v5528_v58 = vld [vmem:[#allocation7 + $0x100] sm:$0xf0] }
 0x1f0   :  { %2618 = vmatpush.bf16.msrb.mxu0 %v4709_v41  ;;  %v4892_v41 = vld [vmem:[#allocation7 + $0xd8] sm:$0xf] }
 0x1f1   :  { %v4893_v44 = vor.u32 %v5524_v14, %v4892_v41  ;;  %v4924_v14 = vld [vmem:[#allocation7 + $0x110] sm:$0xf] }
 0x1f2   :  { %3131 = vmatpush.bf16.msra.mxu3 %v4941_v62  ;;  %3121 = vmatpush.bf16.msrb.mxu1 %v4797_v0  ;;  %v5062_v62 = vld [vmem:[#allocation7 + $0x234] sm:$0xf0]  ;;  %v5529_v0 = vld [vmem:[#allocation7 + $0x10c] sm:$0xf] }
 0x1f3   :  { %v5065_v42 = vor.u32 %v5565_v61, %v5062_v62  ;;  %v4864_v61 = vld [vmem:[#allocation7 + $0x98] sm:$0xf] }
 0x1f4   :  { %2619 = vmatpush.bf16.msrb.mxu0 %v4697_v46  ;;  %v5037_v46 = vor.u32 %v5560_v45, %v5036_v43  ;;  %v5531_v43 = vld [vmem:[#allocation7 + $0x118] sm:$0xf0]  ;;  %v4976_v45 = vld [vmem:[#allocation7 + $0x180] sm:$0xf] }
 0x1f6   :  { %3132 = vmatpush.bf16.msra.mxu3 %v4929_v6  ;;  %3122 = vmatpush.bf16.msrb.mxu1 %v4785_v9  ;;  %v5012_v6 = vld [vmem:[#allocation7 + $0x1c8] sm:$0xf]  ;;  %v5562_v9 = vld [vmem:[#allocation7 + $0x214] sm:$0xf] }
 0x1f7   :  { %2620 = vmatmul.bf16.vlgmr.msrb.gmra.mxu0 %v2019_v33  ;;  %v5049_v33 = vor.u32 %v5563_v32, %v5048_v30  ;;  %v5013_v8 = vor.u32 %v5554_v7, %v5012_v6  ;;  %v5053_v11 = vor.u32 %v5562_v9, %v5050_v10  ;;  %v5534_v30 = vld [vmem:[#allocation7 + $0x130] sm:$0xf0]  ;;  %v4988_v32 = vld [vmem:[#allocation7 + $0x198] sm:$0xf]  ;;  %v4990_v6 = vld [vmem:[#allocation7 + $0x1a4] sm:$0xf0] }
 0x1f8   :  { %3157 = vmatpush.bf16.msra.mxu0 %v4873_v47  ;;  %v5496_v47 = vld [vmem:[#allocation7 + $0x4] sm:$0xf]  ;;  %v4852_v7 = vld [vmem:[#allocation7 + $0x80] sm:$0xf]  ;;  %v5513_v9 = vld [vmem:[#allocation7 + $0x88] sm:$0xf0] }
 0x1f9   :  { %2592 = vmatmul.bf16.vlgmr.msrb.gmra.mxu3 %v6293_v53  ;;  %v5508_v53 = vld [vmem:[#allocation7 + $0x64] sm:$0xf]  ;;  %3144 = vmatpush.bf16.msra.mxu2 %v5049_v33 }
 0x1fa   :  { %v4837_v3 = vor.u32 %v5508_v53, %v4834_v1  ;;  %3171 = vmatpush.bf16.msra.mxu1 %v4969_v54  ;;  %3133 = vmatpush.bf16.msra.mxu3 %v4917_v17  ;;  %v4918_v53 = vld [vmem:[#allocation7 + $0x114] sm:$0xf0]  ;;  %v4949_v54 = vor.u32 %v5537_v2, %v4948_v16  ;;  %v5000_v17 = vld [vmem:[#allocation7 + $0x1b0] sm:$0xf]  ;;  %v5548_v33 = vld [vmem:[#allocation7 + $0x1a0] sm:$0xf0] }
 0x1fb   :  { %v4921_v1 = vor.u32 %v5529_v0, %v4918_v53  ;;  %v5001_v22 = vor.u32 %v5551_v18, %v5000_v17  ;;  %v4989_v34 = vor.u32 %v5548_v33, %v4988_v32  ;;  %v4900_v53 = vld [vmem:[#allocation7 + $0xe0] sm:$0xf]  ;;  %v5544_v16 = vld [vmem:[#allocation7 + $0x184] sm:$0xf]  ;;  %v4978_v2 = vld [vmem:[#allocation7 + $0x18c] sm:$0xf0] }
 0x1fc   :  { %3158 = vmatpush.bf16.msra.mxu0 %v4861_v39  ;;  %v4789_v39 = vor.u32 %v5496_v47, %v4786_v48  ;;  %v4981_v18 = vor.u32 %v5544_v16, %v4978_v2  ;;  %v5008_v16 = vld [vmem:[#allocation7 + $0x1b8] sm:$0xf]  ;;  %v5552_v2 = vld [vmem:[#allocation7 + $0x1c0] sm:$0xf0] }
 0x1fd   :  { %3145 = vmatpush.bf16.msra.mxu2 %v5037_v46  ;;  %v5545_v46 = vld [vmem:[#allocation7 + $0x188] sm:$0xf0] }
 0x1fe   :  { %3172 = vmatpush.bf16.msra.mxu1 %v4957_v28  ;;  %3134 = vmatpush.bf16.msra.mxu3 %v4905_v31  ;;  %v4894_v28 = vld [vmem:[#allocation7 + $0xe4] sm:$0xf0]  ;;  %v4937_v31 = vor.u32 %v5534_v30, %v4936_v23  ;;  %v4977_v48 = vor.u32 %v5545_v46, %v4976_v45  ;;  %v4804_v45 = vld [vmem:[#allocation7 + $0x20] sm:$0xf]  ;;  %v5501_v46 = vld [vmem:[#allocation7 + $0x28] sm:$0xf0] }
 0x1ff   :  { %v4897_v29 = vor.u32 %v5523_v27, %v4894_v28  ;;  %v4828_v28 = vld [vmem:[#allocation7 + $0x50] sm:$0xf] }
 0x200   :  { %3159 = vmatpush.bf16.msra.mxu0 %v4849_v37  ;;  %v5557_v37 = vld [vmem:[#allocation7 + $0x1e8] sm:$0xf0] }
 0x201   :  { %v5025_v63 = vor.u32 %v5557_v37, %v5024_v59  ;;  %v4913_v59 = vor.u32 %v5528_v58, %v4912_v57  ;;  %v5002_v37 = vld [vmem:[#allocation7 + $0x1bc] sm:$0xf0]  ;;  %v5056_v58 = vld [vmem:[#allocation7 + $0x218] sm:$0xf] }
 0x202   :  { %3173 = vmatpush.bf16.msra.mxu1 %v4945_v40  ;;  %3135 = vmatpush.bf16.msra.mxu3 %v4893_v44  ;;  %v4882_v40 = vld [vmem:[#allocation7 + $0xcc] sm:$0xf0]  ;;  %v4925_v44 = vor.u32 %v5531_v43, %v4924_v14 }
 0x203   :  { %3146 = vmatpush.bf16.msra.mxu2 %v5025_v63  ;;  %v4885_v41 = vor.u32 %v5520_v50, %v4882_v40 }
 0x204   :  { %3160 = vmatpush.bf16.msra.mxu0 %v4837_v3  ;;  %v4960_v3 = vld [vmem:[#allocation7 + $0x158] sm:$0xf] }
 0x205   :  { %v4961_v5 = vor.u32 %v5540_v4, %v4960_v3 }
 0x206   :  { %3174 = vmatpush.bf16.msra.mxu1 %v4933_v55  ;;  %3136 = vmatpush.bf16.msra.mxu3 %v4881_v60  ;;  %v5550_v60 = vld [vmem:[#allocation7 + $0x1b4] sm:$0xf] }
 0x207   :  { %3147 = vmatpush.bf16.msra.mxu2 %v5013_v8  ;;  %v5005_v63 = vor.u32 %v5550_v60, %v5002_v37 }
 0x208   :  { %3161 = vmatpush.bf16.msra.mxu0 %v4825_v13  ;;  %v4906_v13 = vld [vmem:[#allocation7 + $0xfc] sm:$0xf0] }
 0x209   :  { %v4909_v15 = vor.u32 %v5526_v12, %v4906_v13  ;;  %v4888_v12 = vld [vmem:[#allocation7 + $0xc8] sm:$0xf]  ;;  %v5522_v13 = vld [vmem:[#allocation7 + $0xd0] sm:$0xf0] }
 0x20a   :  { %3185 = vmatpush.bf16.msrb.mxu3 %v5065_v42  ;;  %3175 = vmatpush.bf16.msra.mxu1 %v4921_v1  ;;  %v5516_v42 = vld [vmem:[#allocation7 + $0xa0] sm:$0xf0]  ;;  %v5525_v1 = vld [vmem:[#allocation7 + $0xe8] sm:$0xf0] }
 0x20b   :  { %3148 = vmatpush.bf16.msra.mxu2 %v5001_v22  ;;  %v4865_v0 = vor.u32 %v5516_v42, %v4864_v61  ;;  %v4901_v3 = vor.u32 %v5525_v1, %v4900_v53  ;;  %v5510_v22 = vld [vmem:[#allocation7 + $0x70] sm:$0xf0]  ;;  %v5032_v53 = vld [vmem:[#allocation7 + $0x1e8] sm:$0xf] }
 0x20c   :  { %3162 = vmatpush.bf16.msra.mxu0 %v4813_v26  ;;  %v5041_v26 = vor.u32 %v5559_v24, %v5038_v25  ;;  %v5558_v1 = vld [vmem:[#allocation7 + $0x1f0] sm:$0xf0] }
 0x20e   :  { %3186 = vmatpush.bf16.msrb.mxu3 %v5053_v11  ;;  %3176 = vmatpush.bf16.msra.mxu1 %v4909_v15  ;;  %v4853_v11 = vor.u32 %v5513_v9, %v4852_v7  ;;  %v4889_v15 = vor.u32 %v5522_v13, %v4888_v12  ;;  %v5555_v9 = vld [vmem:[#allocation7 + $0x1d8] sm:$0xf0] }
 0x20f   :  { %3149 = vmatpush.bf16.msra.mxu2 %v4989_v34  ;;  %v4816_v34 = vld [vmem:[#allocation7 + $0x38] sm:$0xf] }
 0x210   :  { %3163 = vmatpush.bf16.msra.mxu0 %v4801_v38  ;;  %v5029_v38 = vor.u32 %v5556_v35, %v5026_v36  ;;  %v5504_v35 = vld [vmem:[#allocation7 + $0x40] sm:$0xf0] }
 0x211   :  { %v4817_v40 = vor.u32 %v5504_v35, %v4816_v34  ;;  %v5580_v34 = vld [vmem:[%s6411_s5 + $0x60] sm:$0xff]  ;;  %v5571_v35 = vld [vmem:[%s6411_s5 + $0x18] sm:$0xff] }
 0x212   :  { %3187 = vmatpush.bf16.msrb.mxu3 %v5041_v26  ;;  %3177 = vmatpush.bf16.msra.mxu1 %v4897_v29  ;;  %v5507_v29 = vld [vmem:[#allocation7 + $0x58] sm:$0xf0] }
 0x213   :  { %3150 = vmatpush.bf16.msra.mxu2 %v4977_v48 }
 0x214   :  { %3164 = vmatpush.bf16.msra.mxu0 %v4789_v39  ;;  %v5014_v39 = vld [vmem:[#allocation7 + $0x1d4] sm:$0xf0] }
 0x215   :  { %v5017_v51 = vor.u32 %v5553_v20, %v5014_v39  ;;  %v5068_v20 = vld [vmem:[#allocation7 + $0x230] sm:$0xf]  ;;  %v5567_v39 = vld [vmem:[#allocation7 + $0x238] sm:$0xf0] }
 0x216   :  { %3188 = vmatpush.bf16.msrb.mxu3 %v5029_v38  ;;  %3178 = vmatpush.bf16.msra.mxu1 %v4885_v41 }
 0x218   :  { %3213 = vmatpush.bf16.msrb.mxu0 %v4973_v56  ;;  %v4877_v56 = vor.u32 %v5519_v52, %v4876_v49  ;;  %v4805_v49 = vor.u32 %v5501_v46, %v4804_v45  ;;  %v5589_v45 = vld [vmem:[%s6411_s5 + $0xa8] sm:$0xff]  ;;  %v5568_v46 = vld [vmem:[%s6411_s5] sm:$0xff] }
 0x21a   :  { %3189 = vmatpush.bf16.msrb.mxu3 %v5017_v51  ;;  %3199 = vmatpush.bf16.msrb.mxu2 %v4877_v56  ;;  %v5069_v56 = vor.u32 %v5567_v39, %v5068_v20  ;;  %v5588_v20 = vld [vmem:[%s6411_s5 + $0xa0] sm:$0xff] }
 0x21c   :  { %3214 = vmatpush.bf16.msrb.mxu0 %v4961_v5  ;;  %v5547_v5 = vld [vmem:[#allocation7 + $0x19c] sm:$0xf] }
 0x21d   :  { %v4993_v8 = vor.u32 %v5547_v5, %v4990_v6  ;;  %v5033_v5 = vor.u32 %v5558_v1, %v5032_v53 }
 0x21e   :  { %3190 = vmatpush.bf16.msrb.mxu3 %v5005_v63  ;;  %3200 = vmatpush.bf16.msrb.mxu2 %v4865_v0  ;;  %v5561_v63 = vld [vmem:[#allocation7 + $0x208] sm:$0xf0] }
 0x220   :  { %3215 = vmatpush.bf16.msrb.mxu0 %v4949_v54  ;;  %v4840_v54 = vld [vmem:[#allocation7 + $0x68] sm:$0xf] }
 0x221   :  { %v4841_v24 = vor.u32 %v5510_v22, %v4840_v54  ;;  %v5549_v22 = vld [vmem:[#allocation7 + $0x1a8] sm:$0xf0] }
 0x222   :  { %3191 = vmatpush.bf16.msrb.mxu3 %v4993_v8  ;;  %3201 = vmatpush.bf16.msrb.mxu2 %v4853_v11  ;;  %v5020_v8 = vld [vmem:[#allocation7 + $0x1d0] sm:$0xf] }
 0x223   :  { %v5021_v12 = vor.u32 %v5555_v9, %v5020_v8 }
 0x224   :  { %3216 = vmatpush.bf16.msrb.mxu0 %v4937_v31  ;;  %v4829_v31 = vor.u32 %v5507_v29, %v4828_v28  ;;  %v5575_v28 = vld [vmem:[%s6411_s5 + $0x38] sm:$0xff] }
 0x225   :  { %v5583_v29 = vld [vmem:[%s6411_s5 + $0x78] sm:$0xff] }
 0x226   :  { %3192 = vmatpush.bf16.msrb.mxu3 %v4981_v18  ;;  %3202 = vmatpush.bf16.msrb.mxu2 %v4841_v24  ;;  %v4996_v18 = vld [vmem:[#allocation7 + $0x1a0] sm:$0xf] }
 0x227   :  { %v4997_v24 = vor.u32 %v5549_v22, %v4996_v18 }
 0x228   :  { %3217 = vmatpush.bf16.msrb.mxu0 %v4925_v44 }
 0x22a   :  { %3203 = vmatpush.bf16.msrb.mxu2 %v4829_v31  ;;  %v5573_v31 = vld [vmem:[%s6411_s5 + $0x28] sm:$0xff] }
 0x22c   :  { %3218 = vmatpush.bf16.msrb.mxu0 %v4913_v59 }
 0x22e   :  { %3204 = vmatpush.bf16.msrb.mxu2 %v4817_v40  ;;  %v5578_v40 = vld [vmem:[%s6411_s5 + $0x50] sm:$0xff] }
 0x230   :  { %3219 = vmatpush.bf16.msrb.mxu0 %v4901_v3 }
 0x232   :  { %3205 = vmatpush.bf16.msrb.mxu2 %v4805_v49 }
 0x234   :  { %3220 = vmatpush.bf16.msrb.mxu0 %v4889_v15 }
 0x254   :  { %v6298_v19 = vpop.f32.mrf.mxu0  ;;  %v6300_v21 = vpop.f32.mrf.mxu1 }
 0x255   :  { %v2524_v36 = vadd.f32 %v6300_v21, %v6298_v19  ;;  %v4792_v19 = vld [vmem:[#allocation7 + $0x8] sm:$0xf]  ;;  %v5498_v21 = vld [vmem:[#allocation7 + $0x10] sm:$0xf0] }
 0x25b   :  { %v2551_v62 = vpop.f32.mrf.mxu2 }
 0x25c   :  { %v6302_v47 = vpop.f32.mrf.mxu0  ;;  %v2525_v55 = vpop.f32.mrf.mxu1 }
 0x25d   :  { %v2526_v41 = vadd.f32 %v2525_v55, %v6302_v47  ;;  %v5564_v47 = vld [vmem:[#allocation7 + $0x220] sm:$0xf0]  ;;  %v4793_v55 = vor.u32 %v5498_v21, %v4792_v19  ;;  %v5585_v19 = vld [vmem:[%s6411_s5 + $0x88] sm:$0xff] }
 0x25e   :  { %v5057_v61 = vor.u32 %v5564_v47, %v5056_v58  ;;  %v5584_v58 = vld [vmem:[%s6411_s5 + $0x80] sm:$0xff] }
 0x25f   :  { %3206 = vmatpush.bf16.msrb.mxu2 %v4793_v55 }
 0x263   :  { %v2553_v25 = vpop.f32.mrf.mxu2 }
 0x264   :  { %v2565_v4 = vpop.f32.mrf.mxu0 }
 0x265   :  { %v2566_v17 = vadd.f32 %v2565_v4, %v2551_v62  ;;  %v5044_v62 = vld [vmem:[#allocation7 + $0x200] sm:$0xf] }
 0x266   :  { %v2579_v10 = vpop.f32.mrf.mxu1  ;;  %v5045_v42 = vor.u32 %v5561_v63, %v5044_v62 }
 0x267   :  { %v2580_v23 = vadd.f32 %v2579_v10, %v2566_v17  ;;  %v5009_v17 = vor.u32 %v5552_v2, %v5008_v16 }
 0x269   :  { %v2627_v38 = vmax.f32 %v2580_v23, 0.0  ;;  %v5574_v23 = vld [vmem:[%s6411_s5 + $0x30] sm:$0xff] }
 0x26b   :  { %v2607_v59 = vpop.f32.mrf.mxu2 }
 0x26c   :  { %v2537_v26 = vpop.f32.mrf.mxu3  ;;  %v2567_v27 = vpop.f32.mrf.mxu0 }
 0x26d   :  { %v2568_v30 = vadd.f32 %v2567_v27, %v2553_v25  ;;  %v2538_v14 = vadd.f32 %v2537_v26, %v2524_v36  ;;  %v4984_v25 = vld [vmem:[#allocation7 + $0x188] sm:$0xf]  ;;  %v5546_v26 = vld [vmem:[#allocation7 + $0x190] sm:$0xf0]  ;;  %v5579_v36 = vld [vmem:[%s6411_s5 + $0x58] sm:$0xff] }
 0x26e   :  { %v2581_v32 = vpop.f32.mrf.mxu1  ;;  %v4985_v27 = vor.u32 %v5546_v26, %v4984_v25 }
 0x26f   :  { %v2582_v33 = vadd.f32 %v2581_v32, %v2568_v30  ;;  %v2626_v51 = vmax.f32 %v2538_v14, 0.0  ;;  %v5582_v30 = vld [vmem:[%s6411_s5 + $0x70] sm:$0xff]  ;;  %v5581_v32 = vld [vmem:[%s6411_s5 + $0x68] sm:$0xff] }
 0x270   :  { %v5569_v14 = vld [vmem:[%s6411_s5 + $0x8] sm:$0xff] }
 0x271   :  { %v2630_v50 = vmax.f32 %v2582_v33, 0.0  ;;  %v5572_v33 = vld [vmem:[%s6411_s5 + $0x20] sm:$0xff] }
 0x273   :  { %v2633_v43 = vpack.c.bf16 %v2630_v50, %v2627_v38  ;;  %v2609_v3 = vpop.f32.mrf.mxu2  ;;  %v5591_v38 = vld [vmem:[%s6411_s5 + $0xb8] sm:$0xff]  ;;  %v5570_v50 = vld [vmem:[%s6411_s5 + $0x10] sm:$0xff] }
 0x274   :  { %v2539_v44 = vpop.f32.mrf.mxu3  ;;  %v2621_v60 = vpop.f32.mrf.mxu0 }
 0x275   :  { %v2540_v48 = vadd.f32 %v2539_v44, %v2526_v41  ;;  %3137 = vmatmul.bf16.vlgmr.msra.gmra.mxu3 %v2633_v43  ;;  %v5590_v41 = vld [vmem:[%s6411_s5 + $0xb0] sm:$0xff] }
 0x276   :  { %3442 = vmatpush.bf16.msra.mxu3 %v5575_v28  ;;  %v5598_v28 = vld [vmem:[%s6412_s6 + $0x30] sm:$0xff] }
 0x277   :  { %v2629_v52 = vmax.f32 %v2540_v48, 0.0  ;;  %v5576_v48 = vld [vmem:[%s6411_s5 + $0x40] sm:$0xff] }
 0x279   :  { %v2632_v57 = vpack.c.bf16 %v2629_v52, %v2626_v51  ;;  %v5587_v51 = vld [vmem:[%s6411_s5 + $0x98] sm:$0xff]  ;;  %v5586_v52 = vld [vmem:[%s6411_s5 + $0x90] sm:$0xff] }
 0x27a   :  { %3443 = vmatpush.bf16.msra.mxu3 %v5574_v23  ;;  %v5596_v23 = vld [vmem:[%s6412_s6 + $0x20] sm:$0xff] }
 0x27b   :  { %3123 = vmatmul.bf16.vlgmr.msrb.gmra.mxu1 %v2632_v57  ;;  %3165 = vmatmul.bf16.vlgmr.msra.gmra.mxu0 %v2632_v57 }
 0x27c   :  { %v2593_v37 = vpop.f32.mrf.mxu3  ;;  %3227 = vmatpush.bf16.msrb.mxu1 %v5069_v56  ;;  %v2623_v10 = vpop.f32.mrf.mxu0  ;;  %3470 = vmatpush.bf16.msra.mxu0 %v5591_v38 }
 0x27d   :  { %v2608_v0 = vadd.f32 %v2607_v59, %v2593_v37  ;;  %v5599_v59 = vld [vmem:[%s6412_s6 + $0x38] sm:$0xff] }
 0x27e   :  { %3444 = vmatpush.bf16.msra.mxu3 %v5573_v31  ;;  %v5594_v31 = vld [vmem:[%s6412_s6 + $0x10] sm:$0xff] }
 0x27f   :  { %v2622_v6 = vadd.f32 %v2621_v60, %v2608_v0 }
 0x280   :  { %3228 = vmatpush.bf16.msrb.mxu1 %v5057_v61  ;;  %3471 = vmatpush.bf16.msra.mxu0 %v5590_v41 }
 0x281   :  { %v2628_v13 = vmax.f32 %v2622_v6, 0.0 }
 0x282   :  { %3445 = vmatpush.bf16.msra.mxu3 %v5572_v33  ;;  %v5592_v33 = vld [vmem:[%s6412_s6] sm:$0xff] }
 0x284   :  { %v2595_v4 = vpop.f32.mrf.mxu3  ;;  %3229 = vmatpush.bf16.msrb.mxu1 %v5045_v42  ;;  %3472 = vmatpush.bf16.msra.mxu0 %v5589_v45 }
 0x285   :  { %v2610_v7 = vadd.f32 %v2609_v3, %v2595_v4 }
 0x286   :  { %3446 = vmatpush.bf16.msra.mxu3 %v5571_v35 }
 0x287   :  { %v2624_v11 = vadd.f32 %v2623_v10, %v2610_v7 }
 0x288   :  { %3230 = vmatpush.bf16.msrb.mxu1 %v5033_v5  ;;  %3473 = vmatpush.bf16.msra.mxu0 %v5588_v20 }
 0x289   :  { %v2631_v15 = vmax.f32 %v2624_v11, 0.0 }
 0x28a   :  { %3447 = vmatpush.bf16.msra.mxu3 %v5570_v50 }
 0x28b   :  { %v2634_v54 = vpack.c.bf16 %v2631_v15, %v2628_v13  ;;  %3179 = vmatmul.bf16.vlgmr.msra.gmra.mxu1 %v2633_v43  ;;  %3221 = vmatmul.bf16.vlgmr.msrb.gmra.mxu0 %v2633_v43  ;;  %v5577_v43 = vld [vmem:[%s6411_s5 + $0x48] sm:$0xff] }
 0x28c   :  { %3231 = vmatpush.bf16.msrb.mxu1 %v5021_v12  ;;  %3474 = vmatpush.bf16.msra.mxu0 %v5587_v51 }
 0x28d   :  { %3151 = vmatmul.bf16.vlgmr.msra.gmra.mxu2 %v2634_v54  ;;  %3193 = vmatmul.bf16.vlgmr.msrb.gmra.mxu3 %v2634_v54 }
 0x28e   :  { %3456 = vmatpush.bf16.msra.mxu2 %v5583_v29  ;;  %3448 = vmatpush.bf16.msra.mxu3 %v5569_v14  ;;  %v5597_v29 = vld [vmem:[%s6412_s6 + $0x28] sm:$0xff] }
 0x290   :  { %3232 = vmatpush.bf16.msrb.mxu1 %v5009_v17  ;;  %3475 = vmatpush.bf16.msra.mxu0 %v5586_v52 }
 0x292   :  { %3457 = vmatpush.bf16.msra.mxu2 %v5582_v30  ;;  %3449 = vmatpush.bf16.msra.mxu3 %v5568_v46  ;;  %v5595_v30 = vld [vmem:[%s6412_s6 + $0x18] sm:$0xff] }
 0x294   :  { %3233 = vmatpush.bf16.msrb.mxu1 %v4997_v24  ;;  %3476 = vmatpush.bf16.msra.mxu0 %v5585_v19 }
 0x296   :  { %3458 = vmatpush.bf16.msra.mxu2 %v5581_v32  ;;  %v5593_v32 = vld [vmem:[%s6412_s6 + $0x8] sm:$0xff] }
 0x298   :  { %3234 = vmatpush.bf16.msrb.mxu1 %v4985_v27  ;;  %3477 = vmatpush.bf16.msra.mxu0 %v5584_v58 }
 0x29a   :  { %3459 = vmatpush.bf16.msra.mxu2 %v5580_v34 }
 0x29b   :  { %3235 = vmatmul.bf16.vlgmr.msrb.gmra.mxu1 %v2634_v54 }
 0x29c   :  { %3551 = vmatpush.bf16.msra.mxu1 %v5599_v59 }
 0x29d   :  { %3207 = vmatmul.bf16.vlgmr.msrb.gmra.mxu2 %v2632_v57 }
 0x29e   :  { %3460 = vmatpush.bf16.msra.mxu2 %v5579_v36 }
 0x2a0   :  { %3552 = vmatpush.bf16.msra.mxu1 %v5598_v28 }
 0x2a2   :  { %3461 = vmatpush.bf16.msra.mxu2 %v5578_v40 }
 0x2a4   :  { %3553 = vmatpush.bf16.msra.mxu1 %v5597_v29 }
 0x2a6   :  { %3462 = vmatpush.bf16.msra.mxu2 %v5577_v43 }
 0x2a8   :  { %3554 = vmatpush.bf16.msra.mxu1 %v5596_v23 }
 0x2aa   :  { %3463 = vmatpush.bf16.msra.mxu2 %v5576_v48 }
 0x2ac   :  { %3555 = vmatpush.bf16.msra.mxu1 %v5595_v30 }
 0x2b0   :  { %3556 = vmatpush.bf16.msra.mxu1 %v5594_v31 }
 0x2b4   :  { %3557 = vmatpush.bf16.msra.mxu1 %v5593_v32 }
 0x2b8   :  { %3558 = vmatpush.bf16.msra.mxu1 %v5592_v33 }
 0x2f8   :  { %v3124_v44 = vpop.f32.mrf.mxu1  ;;  %v3138_v39 = vpop.f32.mrf.mxu3 }
 0x2f9   :  { %v3166_v21 = vpop.f32.mrf.mxu0  ;;  %v3139_v37 = vadd.f32 %v3138_v39, %v3124_v44 }
 0x300   :  { %v3126_v49 = vpop.f32.mrf.mxu1  ;;  %v3140_v56 = vpop.f32.mrf.mxu3 }
 0x301   :  { %v3168_v60 = vpop.f32.mrf.mxu0  ;;  %v3141_v63 = vadd.f32 %v3140_v56, %v3126_v49 }
 0x308   :  { %v3180_v57 = vpop.f32.mrf.mxu1 }
 0x309   :  { %v3181_v62 = vadd.f32 %v3180_v57, %v3166_v21  ;;  %v3222_v11 = vpop.f32.mrf.mxu0 }
 0x310   :  { %v3152_v47 = vpop.f32.mrf.mxu2  ;;  %v3194_v55 = vpop.f32.mrf.mxu3 }
 0x311   :  { %v3182_v61 = vpop.f32.mrf.mxu1  ;;  %v3153_v42 = vadd.f32 %v3152_v47, %v3139_v37  ;;  %v3195_v53 = vadd.f32 %v3194_v55, %v3181_v62  ;;  %v3224_v2 = vpop.f32.mrf.mxu0 }
 0x312   :  { %v3183_v0 = vadd.f32 %v3182_v61, %v3168_v60 }
 0x313   :  { %v3241_v6 = vmax.f32 %v3153_v42, 0.0  ;;  %v3242_v8 = vmax.f32 %v3195_v53, 0.0 }
 0x318   :  { %v3154_v1 = vpop.f32.mrf.mxu2  ;;  %v3196_v4 = vpop.f32.mrf.mxu3 }
 0x319   :  { %v3155_v3 = vadd.f32 %v3154_v1, %v3141_v63  ;;  %v3197_v5 = vadd.f32 %v3196_v4, %v3183_v0  ;;  %v3236_v13 = vpop.f32.mrf.mxu1 }
 0x31b   :  { %v3244_v7 = vmax.f32 %v3155_v3, 0.0  ;;  %v3245_v9 = vmax.f32 %v3197_v5, 0.0 }
 0x31d   :  { %v3247_v10 = vpack.c.bf16 %v3244_v7, %v3241_v6  ;;  %v3248_v12 = vpack.c.bf16 %v3245_v9, %v3242_v8 }
 0x31f   :  { %3450 = vmatmul.bf16.vlgmr.msra.gmra.mxu3 %v3247_v10  ;;  %3464 = vmatmul.bf16.vlgmr.msra.gmra.mxu2 %v3248_v12 }
 0x320   :  { %v3208_v15 = vpop.f32.mrf.mxu2 }
 0x321   :  { %v3223_v16 = vadd.f32 %v3222_v11, %v3208_v15  ;;  %v3238_v22 = vpop.f32.mrf.mxu1 }
 0x323   :  { %v3237_v17 = vadd.f32 %v3236_v13, %v3223_v16 }
 0x325   :  { %v3243_v25 = vmax.f32 %v3237_v17, 0.0 }
 0x328   :  { %v3210_v54 = vpop.f32.mrf.mxu2 }
 0x329   :  { %v3225_v18 = vadd.f32 %v3224_v2, %v3210_v54 }
 0x32b   :  { %v3239_v24 = vadd.f32 %v3238_v22, %v3225_v18 }
 0x32d   :  { %v3246_v26 = vmax.f32 %v3239_v24, 0.0 }
 0x32f   :  { %v3249_v27 = vpack.c.bf16 %v3246_v26, %v3243_v25 }
 0x331   :  { %3478 = vmatmul.bf16.vlgmr.msra.gmra.mxu0 %v3249_v27 }
 0x3a2   :  { %v3451_v34 = vpop.f32.mrf.mxu3  ;;  %v3465_v35 = vpop.f32.mrf.mxu2 }
 0x3a3   :  { %v3466_v40 = vadd.f32 %v3465_v35, %v3451_v34 }
 0x3aa   :  { %v3453_v38 = vpop.f32.mrf.mxu3  ;;  %v3467_v50 = vpop.f32.mrf.mxu2 }
 0x3ab   :  { %v3468_v41 = vadd.f32 %v3467_v50, %v3453_v38 }
 0x3ae   :  { %v3479_v36 = vpop.f32.mrf.mxu0 }
 0x3af   :  { %v3480_v14 = vadd.f32 %v3479_v36, %v3466_v40 }
 0x3b1   :  { %v3484_v45 = vmax.f32 %v3480_v14, 0.0 }
 0x3b6   :  { %v3481_v43 = vpop.f32.mrf.mxu0 }
 0x3b7   :  { %v3482_v44 = vadd.f32 %v3481_v43, %v3468_v41 }
 0x3b9   :  { %v3485_v46 = vmax.f32 %v3482_v44, 0.0 }
 0x3bb   :  { %v3486_v48 = vpack.c.bf16 %v3485_v46, %v3484_v45 }
 0x3bd   :  { %3559 = vmatmul.bf16.vlgmr.msra.gmra.mxu1 %v3486_v48 }
 0x43a   :  { %v3560_v20 = vpop.f32.mrf.mxu1 }
 0x43b   :  { %3565 = vst [vmem:[#allocation8] sm:$0xff] %v3560_v20 }
 0x442   :  { %v3562_v39 = vpop.f32.mrf.mxu1 }
 0x443   :  { %3566 = vst [vmem:[#allocation8 + $0x8] sm:$0xff] %v3562_v39 }
 0x444   :  { %3579 = dma.vmem_to_hbm [thread:$0]  %s3572_s1, 256, %s3574_s0, [#allocation4], %s5716_s17, %s5716_s17, %s5717_s18  }
 0x445   :  { %5708 = dma.done.wait [#allocation4], 256  }
 0x446   :  { %5709 = vsyncadd [#allocation4], 4294967040 }
 0x447   :  { %3584 = vsyncpa [#allocation3], 1 }
 0x448   :  { %3585 = vsyncpa [#allocation6], 1 }
 0x449   :  { %3586 = vsyncpa [#allocation4], 1 }

</bundles_post_ra>
